<compile_context>
chip_gen: v7x
topology: tpu7x:2x2x1
jax: 0.10.0
libtpu: 0.0.40
codegen_flags: <defaults>
</compile_context>

<pallas_src>
from functools import partial

import numpy as np
import jax
import jax.numpy as jnp
from jax import lax
from jax.experimental import pallas as pl
from jax.experimental.pallas import tpu as pltpu


def _fused_transform3d_kernel(x_ref, w1_ref, w2_ref, s1_ref, b1_ref, s2_ref,
                              b2_ref, *rest, n_taps, residual):
    # x_ref  : (1, n_taps, MB, Wp*Cin)   bf16  (kd,kh)-tap input slabs
    # w1_ref : (n_taps, Wp*Cin, Wo*expc) bf16  width-Toeplitz fused-conv weights
    # w2_ref : (Wo*expc, Wo*ouc)         bf16  block-diagonal 1x1x1 projection
    # s1/b1  : (1, Wo*expc) f32          folded BN1 scale/shift (tiled over Wo)
    # s2/b2  : (1, Wo*ouc)  f32          folded BN2 scale/shift (tiled over Wo)
    # res_ref: (1, MB, Wo*ouc) f32       residual source (only when residual)
    # out_ref: (1, MB, Wo*ouc)
    if residual:
        res_ref, out_ref = rest
    else:
        (out_ref,) = rest

    # 3D conv = n_taps fat lane-dense matmuls; f32 accumulation in registers.
    acc = jnp.dot(x_ref[0, 0], w1_ref[0], preferred_element_type=jnp.float32)
    for t in range(1, n_taps):
        acc = acc + jnp.dot(x_ref[0, t], w1_ref[t],
                            preferred_element_type=jnp.float32)

    h = jnp.maximum(acc * s1_ref[...] + b1_ref[...], 0.0)        # BN1 + ReLU
    y = jnp.dot(h.astype(jnp.bfloat16), w2_ref[...],             # 1x1x1 proj
                preferred_element_type=jnp.float32)
    y = y * s2_ref[...] + b2_ref[...]                            # BN2
    if residual:
        y = y + res_ref[0]                                       # residual, f32
    out_ref[0] = y.astype(out_ref.dtype)


def _prepare_device_operands(params, *, K, Cin, expc, ouc, Wo, Wp):
    """One-time host-side weight re-layout (not per-step work)."""
    # params["w1"]: (kd, kh, kw, ci, co) f32
    w1 = np.asarray(params["w1"], np.float32)
    toep = np.zeros((K, K, Wp, Cin, Wo, expc), np.float32)
    for kw in range(K):
        for wo in range(Wo):
            # output width wo reads padded input width wo + kw
            toep[:, :, wo + kw, :, wo, :] = w1[:, :, kw]
    w1_toep = jnp.asarray(toep.reshape(K * K, Wp * Cin, Wo * expc),
                          dtype=jnp.bfloat16)

    w2 = np.asarray(params["w2"], np.float32)                   # (expc, ouc)
    w2_bd = jnp.asarray(np.kron(np.eye(Wo, dtype=np.float32), w2),
                        dtype=jnp.bfloat16)                     # block-diagonal

    def tile_row(v, n):
        return jnp.asarray(np.tile(np.asarray(v, np.float32), n)[None, :])

    s1_t = tile_row(params["s1"], Wo)
    b1_t = tile_row(params["b1"], Wo)
    s2_t = tile_row(params["s2"], Wo)
    b2_t = tile_row(params["b2"], Wo)
    return w1_toep, w2_bd, s1_t, b1_t, s2_t, b2_t


def fused_transform3d(x_ncdhw, params, *, inc, ouc, kernel_size, stride,
                      expand_ratio, row_block=64):
    assert stride == 1, "only stride=1 implemented"
    K = kernel_size
    pad = K // 2
    N, C, D, H, W = x_ncdhw.shape
    assert C == inc
    expc = round(ouc * expand_ratio)
    residual = (inc == ouc) and (stride == 1)

    Wp = W + 2 * pad
    WpC = Wp * inc            # Toeplitz contraction depth
    WoE = W * expc            # lane-dense expanded width
    WoO = W * ouc             # lane-dense output width
    M = D * H                 # flattened (depth, height) output rows
    n_taps = K * K

    MB = row_block if (M % row_block == 0) else M   # rows per grid step
    n_chunks = M // MB
    grid = (N, n_chunks)

    # ---- one-shot XLA layout pass: NCDHW -> NDHWC, zero-pad, (kd,kh)-tap
    #      gather into lane-dense (M, Wp*Cin) slabs, cast to bf16 for the MXU.
    x_ndhwc = jnp.transpose(x_ncdhw, (0, 2, 3, 4, 1))
    xp = jnp.pad(x_ndhwc, ((0, 0), (pad, pad), (pad, pad), (pad, pad), (0, 0)))
    taps = [xp[:, kd:kd + D, kh:kh + H].reshape(N, M, WpC)
            for kd in range(K) for kh in range(K)]
    x_taps = jnp.stack(taps, axis=1).astype(jnp.bfloat16)   # (N, K*K, M, WpC)

    # Residual source kept in f32 (skip-connection precision).
    x_res = x_ndhwc.reshape(N, M, W * inc) if residual else None

    w1_toep, w2_bd, s1_t, b1_t, s2_t, b2_t = _prepare_device_operands(
        params, K=K, Cin=inc, expc=expc, ouc=ouc, Wo=W, Wp=Wp)

    kernel = partial(_fused_transform3d_kernel, n_taps=n_taps,
                     residual=residual)

    # Advisory cost estimate (input now read ~1x, in bf16).
    flops = 2 * N * M * (n_taps * WpC * WoE + WoE * WoO)
    bytes_accessed = (x_taps.size * x_taps.dtype.itemsize
                      + w1_toep.size * w1_toep.dtype.itemsize
                      + w2_bd.size * w2_bd.dtype.itemsize
                      + 4 * (s1_t.size + b1_t.size + s2_t.size + b2_t.size)
                      + (x_res.size * x_res.dtype.itemsize if residual else 0)
                      + N * M * WoO * x_ncdhw.dtype.itemsize)

    in_specs = [
        pl.BlockSpec((1, n_taps, MB, WpC), lambda n, c: (n, 0, c, 0)),
        # constant index_maps -> weights/scales DMA'd into VMEM once
        pl.BlockSpec((n_taps, WpC, WoE), lambda n, c: (0, 0, 0)),
        pl.BlockSpec((WoE, WoO), lambda n, c: (0, 0)),
        pl.BlockSpec((1, WoE), lambda n, c: (0, 0)),
        pl.BlockSpec((1, WoE), lambda n, c: (0, 0)),
        pl.BlockSpec((1, WoO), lambda n, c: (0, 0)),
        pl.BlockSpec((1, WoO), lambda n, c: (0, 0)),
    ]
    operands = [x_taps, w1_toep, w2_bd, s1_t, b1_t, s2_t, b2_t]
    if residual:
        in_specs.append(pl.BlockSpec((1, MB, WoO), lambda n, c: (n, c, 0)))
        operands.append(x_res)

    out = pl.pallas_call(
        kernel,
        out_shape=jax.ShapeDtypeStruct((N, M, WoO), x_ncdhw.dtype),
        grid=grid,
        in_specs=in_specs,
        out_specs=pl.BlockSpec((1, MB, WoO), lambda n, c: (n, c, 0)),
        compiler_params=pltpu.CompilerParams(
            dimension_semantics=("parallel", "parallel"),
            vmem_limit_bytes=32 * 1024 * 1024),
        cost_estimate=pl.CostEstimate(flops=flops, transcendentals=0,
                                      bytes_accessed=int(bytes_accessed)),
    )(*operands)

    out = out.reshape(N, D, H, W, ouc)
    return jnp.transpose(out, (0, 4, 1, 2, 3))   # back to NCDHW


def make_params(key, inc, ouc, kernel_size, expand_ratio, eps):
    K = kernel_size
    expc = round(ouc * expand_ratio)
    ks = jax.random.split(key, 10)
    # PyTorch Conv3d weight layout: (out, in, kD, kH, kW)
    w1_oikkk = 0.1 * jax.random.normal(ks[0], (expc, inc, K, K, K),
                                       jnp.float32)
    w2_oi = 0.1 * jax.random.normal(ks[1], (ouc, expc), jnp.float32)
    gamma1 = 1.0 + 0.1 * jax.random.normal(ks[2], (expc,), jnp.float32)
    beta1 = 0.1 * jax.random.normal(ks[3], (expc,), jnp.float32)
    mean1 = 0.05 * jax.random.normal(ks[4], (expc,), jnp.float32)
    var1 = 1.0 + 0.1 * jax.random.uniform(ks[5], (expc,), jnp.float32)
    gamma2 = 1.0 + 0.1 * jax.random.normal(ks[6], (ouc,), jnp.float32)
    beta2 = 0.1 * jax.random.normal(ks[7], (ouc,), jnp.float32)
    mean2 = 0.05 * jax.random.normal(ks[8], (ouc,), jnp.float32)
    var2 = 1.0 + 0.1 * jax.random.uniform(ks[9], (ouc,), jnp.float32)

    # Fold BN (inference) into scale/shift.
    s1 = gamma1 / jnp.sqrt(var1 + eps)
    b1 = beta1 - mean1 * s1
    s2 = gamma2 / jnp.sqrt(var2 + eps)
    b2 = beta2 - mean2 * s2

    kernel_params = {
        "w1": jnp.transpose(w1_oikkk, (2, 3, 4, 1, 0)),  # (kd,kh,kw,ci,co) f32
        "w2": jnp.transpose(w2_oi, (1, 0)),              # (expc, ouc) f32
        "s1": s1, "b1": b1, "s2": s2, "b2": b2,
    }
    ref_params = dict(w1_oikkk=w1_oikkk, w2_oi=w2_oi, gamma1=gamma1,
                      beta1=beta1, mean1=mean1, var1=var1, gamma2=gamma2,
                      beta2=beta2, mean2=mean2, var2=var2)
    return kernel_params, ref_params


def reference(x, p, *, kernel_size, stride, eps, residual):
    pad = kernel_size // 2
    dn = ("NCDHW", "OIDHW", "NCDHW")
    y = lax.conv_general_dilated(x, p["w1_oikkk"], (stride,) * 3,
                                 [(pad, pad)] * 3, dimension_numbers=dn,
                                 precision=lax.Precision.HIGHEST)

    def bn(t, g, b, m, v):
        sh = (1, -1, 1, 1, 1)
        return (t - m.reshape(sh)) / jnp.sqrt(v.reshape(sh) + eps) * \
            g.reshape(sh) + b.reshape(sh)

    y = bn(y, p["gamma1"], p["beta1"], p["mean1"], p["var1"])
    y = jnp.maximum(y, 0.0)
    y = lax.conv_general_dilated(y, p["w2_oi"][..., None, None, None],
                                 (1, 1, 1), [(0, 0)] * 3,
                                 dimension_numbers=dn,
                                 precision=lax.Precision.HIGHEST)
    y = bn(y, p["gamma2"], p["beta2"], p["mean2"], p["var2"])
    if residual:
        y = y + x
    return y


if __name__ == "__main__":
    inc, ouc, kernel_size, stride, expand_ratio = 8, 8, 3, 1, 2.0
    bn_eps = 1e-3
    N, D, H, W = 2, 16, 16, 16   # W*ouc = 128 -> fully lane-dense output store

    key = jax.random.PRNGKey(0)
    kx, kp = jax.random.split(key)
    x = jax.random.normal(kx, (N, inc, D, H, W), jnp.float32)

    kernel_params, ref_params = make_params(kp, inc, ouc, kernel_size,
                                            expand_ratio, bn_eps)

    out = fused_transform3d(x, kernel_params, inc=inc, ouc=ouc,
                            kernel_size=kernel_size, stride=stride,
                            expand_ratio=expand_ratio)
    out = jax.block_until_ready(out)

    ref = reference(x, ref_params, kernel_size=kernel_size, stride=stride,
                    eps=bn_eps, residual=(inc == ouc and stride == 1))
    assert out.shape == ref.shape, (out.shape, ref.shape)
    # Tolerance covers bf16 MXU operands (f32 accumulation / BN / residual).
    err = float(jnp.max(jnp.abs(out - ref)))
    assert jnp.allclose(out, ref, atol=5e-2, rtol=5e-2), err

    print("KERNEL_OK")
</pallas_src>

<mosaic_0001>
module attributes {stable_mosaic.version = 11 : i64} {
  func.func @_fused_transform3d_kernel(%arg0: i32, %arg1: i32, %arg2: memref<1x9x64x144xbf16, #tpu.memory_space<vmem>>, %arg3: memref<9x144x256xbf16, #tpu.memory_space<vmem>>, %arg4: memref<256x128xbf16, #tpu.memory_space<vmem>>, %arg5: memref<1x256xf32, #tpu.memory_space<vmem>>, %arg6: memref<1x256xf32, #tpu.memory_space<vmem>>, %arg7: memref<1x128xf32, #tpu.memory_space<vmem>>, %arg8: memref<1x128xf32, #tpu.memory_space<vmem>>, %arg9: memref<1x64x128xf32, #tpu.memory_space<vmem>>, %arg10: memref<1x64x128xf32, #tpu.memory_space<vmem>>) attributes {dimension_semantics = [#tpu.dimension_semantics<parallel>, #tpu.dimension_semantics<parallel>], iteration_bounds = array<i64: 2, 4>, scalar_prefetch = 0 : i64, scratch_operands = 0 : i64, tpu.core_type = #tpu.core_type<tc>, window_params = [{transform_indices = @transform_0, window_bounds = array<i64: 1, 9, 64, 144>}, {pipeline_mode = #tpu.pipeline_mode<synchronous>, transform_indices = @transform_1, window_bounds = array<i64: 9, 144, 256>}, {pipeline_mode = #tpu.pipeline_mode<synchronous>, transform_indices = @transform_2, window_bounds = array<i64: 256, 128>}, {pipeline_mode = #tpu.pipeline_mode<synchronous>, transform_indices = @transform_3, window_bounds = array<i64: 1, 256>}, {pipeline_mode = #tpu.pipeline_mode<synchronous>, transform_indices = @transform_4, window_bounds = array<i64: 1, 256>}, {pipeline_mode = #tpu.pipeline_mode<synchronous>, transform_indices = @transform_5, window_bounds = array<i64: 1, 128>}, {pipeline_mode = #tpu.pipeline_mode<synchronous>, transform_indices = @transform_6, window_bounds = array<i64: 1, 128>}, {transform_indices = @transform_7, window_bounds = array<i64: 1, 64, 128>}, {transform_indices = @transform_8, window_bounds = array<i64: 1, 64, 128>}]} {
    %c0 = arith.constant 0 : index
    %c0_0 = arith.constant 0 : index
    %c0_1 = arith.constant 0 : index
    %c0_2 = arith.constant 0 : index
    %0 = vector.load %arg2[%c0, %c0_0, %c0_1, %c0_2] : memref<1x9x64x144xbf16, #tpu.memory_space<vmem>>, vector<1x1x64x144xbf16>
    %1 = vector.shape_cast %0 : vector<1x1x64x144xbf16> to vector<64x144xbf16>
    %c0_3 = arith.constant 0 : index
    %c0_4 = arith.constant 0 : index
    %c0_5 = arith.constant 0 : index
    %2 = vector.load %arg3[%c0_3, %c0_4, %c0_5] : memref<9x144x256xbf16, #tpu.memory_space<vmem>>, vector<1x144x256xbf16>
    %3 = vector.shape_cast %2 : vector<1x144x256xbf16> to vector<144x256xbf16>
    %cst = arith.constant dense<0.000000e+00> : vector<64x256xf32>
    %4 = tpu.matmul %1, %3, %cst {dimension_numbers = #tpu.dot_dimension_numbers<[1], [0], [0], [1], [0, 0, 1, 1], [], []>} : vector<64x144xbf16>, vector<144x256xbf16>, vector<64x256xf32> -> vector<64x256xf32>
    %c0_6 = arith.constant 0 : index
    %c1 = arith.constant 1 : index
    %c0_7 = arith.constant 0 : index
    %c0_8 = arith.constant 0 : index
    %5 = vector.load %arg2[%c0_6, %c1, %c0_7, %c0_8] : memref<1x9x64x144xbf16, #tpu.memory_space<vmem>>, vector<1x1x64x144xbf16>
    %6 = vector.shape_cast %5 : vector<1x1x64x144xbf16> to vector<64x144xbf16>
    %c1_9 = arith.constant 1 : index
    %c0_10 = arith.constant 0 : index
    %c0_11 = arith.constant 0 : index
    %7 = vector.load %arg3[%c1_9, %c0_10, %c0_11] : memref<9x144x256xbf16, #tpu.memory_space<vmem>>, vector<1x144x256xbf16>
    %8 = vector.shape_cast %7 : vector<1x144x256xbf16> to vector<144x256xbf16>
    %cst_12 = arith.constant dense<0.000000e+00> : vector<64x256xf32>
    %9 = tpu.matmul %6, %8, %cst_12 {dimension_numbers = #tpu.dot_dimension_numbers<[1], [0], [0], [1], [0, 0, 1, 1], [], []>} : vector<64x144xbf16>, vector<144x256xbf16>, vector<64x256xf32> -> vector<64x256xf32>
    %10 = arith.addf %4, %9 : vector<64x256xf32>
    %c0_13 = arith.constant 0 : index
    %c2 = arith.constant 2 : index
    %c0_14 = arith.constant 0 : index
    %c0_15 = arith.constant 0 : index
    %11 = vector.load %arg2[%c0_13, %c2, %c0_14, %c0_15] : memref<1x9x64x144xbf16, #tpu.memory_space<vmem>>, vector<1x1x64x144xbf16>
    %12 = vector.shape_cast %11 : vector<1x1x64x144xbf16> to vector<64x144xbf16>
    %c2_16 = arith.constant 2 : index
    %c0_17 = arith.constant 0 : index
    %c0_18 = arith.constant 0 : index
    %13 = vector.load %arg3[%c2_16, %c0_17, %c0_18] : memref<9x144x256xbf16, #tpu.memory_space<vmem>>, vector<1x144x256xbf16>
    %14 = vector.shape_cast %13 : vector<1x144x256xbf16> to vector<144x256xbf16>
    %cst_19 = arith.constant dense<0.000000e+00> : vector<64x256xf32>
    %15 = tpu.matmul %12, %14, %cst_19 {dimension_numbers = #tpu.dot_dimension_numbers<[1], [0], [0], [1], [0, 0, 1, 1], [], []>} : vector<64x144xbf16>, vector<144x256xbf16>, vector<64x256xf32> -> vector<64x256xf32>
    %16 = arith.addf %10, %15 : vector<64x256xf32>
    %c0_20 = arith.constant 0 : index
    %c3 = arith.constant 3 : index
    %c0_21 = arith.constant 0 : index
    %c0_22 = arith.constant 0 : index
    %17 = vector.load %arg2[%c0_20, %c3, %c0_21, %c0_22] : memref<1x9x64x144xbf16, #tpu.memory_space<vmem>>, vector<1x1x64x144xbf16>
    %18 = vector.shape_cast %17 : vector<1x1x64x144xbf16> to vector<64x144xbf16>
    %c3_23 = arith.constant 3 : index
    %c0_24 = arith.constant 0 : index
    %c0_25 = arith.constant 0 : index
    %19 = vector.load %arg3[%c3_23, %c0_24, %c0_25] : memref<9x144x256xbf16, #tpu.memory_space<vmem>>, vector<1x144x256xbf16>
    %20 = vector.shape_cast %19 : vector<1x144x256xbf16> to vector<144x256xbf16>
    %cst_26 = arith.constant dense<0.000000e+00> : vector<64x256xf32>
    %21 = tpu.matmul %18, %20, %cst_26 {dimension_numbers = #tpu.dot_dimension_numbers<[1], [0], [0], [1], [0, 0, 1, 1], [], []>} : vector<64x144xbf16>, vector<144x256xbf16>, vector<64x256xf32> -> vector<64x256xf32>
    %22 = arith.addf %16, %21 : vector<64x256xf32>
    %c0_27 = arith.constant 0 : index
    %c4 = arith.constant 4 : index
    %c0_28 = arith.constant 0 : index
    %c0_29 = arith.constant 0 : index
    %23 = vector.load %arg2[%c0_27, %c4, %c0_28, %c0_29] : memref<1x9x64x144xbf16, #tpu.memory_space<vmem>>, vector<1x1x64x144xbf16>
    %24 = vector.shape_cast %23 : vector<1x1x64x144xbf16> to vector<64x144xbf16>
    %c4_30 = arith.constant 4 : index
    %c0_31 = arith.constant 0 : index
    %c0_32 = arith.constant 0 : index
    %25 = vector.load %arg3[%c4_30, %c0_31, %c0_32] : memref<9x144x256xbf16, #tpu.memory_space<vmem>>, vector<1x144x256xbf16>
    %26 = vector.shape_cast %25 : vector<1x144x256xbf16> to vector<144x256xbf16>
    %cst_33 = arith.constant dense<0.000000e+00> : vector<64x256xf32>
    %27 = tpu.matmul %24, %26, %cst_33 {dimension_numbers = #tpu.dot_dimension_numbers<[1], [0], [0], [1], [0, 0, 1, 1], [], []>} : vector<64x144xbf16>, vector<144x256xbf16>, vector<64x256xf32> -> vector<64x256xf32>
    %28 = arith.addf %22, %27 : vector<64x256xf32>
    %c0_34 = arith.constant 0 : index
    %c5 = arith.constant 5 : index
    %c0_35 = arith.constant 0 : index
    %c0_36 = arith.constant 0 : index
    %29 = vector.load %arg2[%c0_34, %c5, %c0_35, %c0_36] : memref<1x9x64x144xbf16, #tpu.memory_space<vmem>>, vector<1x1x64x144xbf16>
    %30 = vector.shape_cast %29 : vector<1x1x64x144xbf16> to vector<64x144xbf16>
    %c5_37 = arith.constant 5 : index
    %c0_38 = arith.constant 0 : index
    %c0_39 = arith.constant 0 : index
    %31 = vector.load %arg3[%c5_37, %c0_38, %c0_39] : memref<9x144x256xbf16, #tpu.memory_space<vmem>>, vector<1x144x256xbf16>
    %32 = vector.shape_cast %31 : vector<1x144x256xbf16> to vector<144x256xbf16>
    %cst_40 = arith.constant dense<0.000000e+00> : vector<64x256xf32>
    %33 = tpu.matmul %30, %32, %cst_40 {dimension_numbers = #tpu.dot_dimension_numbers<[1], [0], [0], [1], [0, 0, 1, 1], [], []>} : vector<64x144xbf16>, vector<144x256xbf16>, vector<64x256xf32> -> vector<64x256xf32>
    %34 = arith.addf %28, %33 : vector<64x256xf32>
    %c0_41 = arith.constant 0 : index
    %c6 = arith.constant 6 : index
    %c0_42 = arith.constant 0 : index
    %c0_43 = arith.constant 0 : index
    %35 = vector.load %arg2[%c0_41, %c6, %c0_42, %c0_43] : memref<1x9x64x144xbf16, #tpu.memory_space<vmem>>, vector<1x1x64x144xbf16>
    %36 = vector.shape_cast %35 : vector<1x1x64x144xbf16> to vector<64x144xbf16>
    %c6_44 = arith.constant 6 : index
    %c0_45 = arith.constant 0 : index
    %c0_46 = arith.constant 0 : index
    %37 = vector.load %arg3[%c6_44, %c0_45, %c0_46] : memref<9x144x256xbf16, #tpu.memory_space<vmem>>, vector<1x144x256xbf16>
    %38 = vector.shape_cast %37 : vector<1x144x256xbf16> to vector<144x256xbf16>
    %cst_47 = arith.constant dense<0.000000e+00> : vector<64x256xf32>
    %39 = tpu.matmul %36, %38, %cst_47 {dimension_numbers = #tpu.dot_dimension_numbers<[1], [0], [0], [1], [0, 0, 1, 1], [], []>} : vector<64x144xbf16>, vector<144x256xbf16>, vector<64x256xf32> -> vector<64x256xf32>
    %40 = arith.addf %34, %39 : vector<64x256xf32>
    %c0_48 = arith.constant 0 : index
    %c7 = arith.constant 7 : index
    %c0_49 = arith.constant 0 : index
    %c0_50 = arith.constant 0 : index
    %41 = vector.load %arg2[%c0_48, %c7, %c0_49, %c0_50] : memref<1x9x64x144xbf16, #tpu.memory_space<vmem>>, vector<1x1x64x144xbf16>
    %42 = vector.shape_cast %41 : vector<1x1x64x144xbf16> to vector<64x144xbf16>
    %c7_51 = arith.constant 7 : index
    %c0_52 = arith.constant 0 : index
    %c0_53 = arith.constant 0 : index
    %43 = vector.load %arg3[%c7_51, %c0_52, %c0_53] : memref<9x144x256xbf16, #tpu.memory_space<vmem>>, vector<1x144x256xbf16>
    %44 = vector.shape_cast %43 : vector<1x144x256xbf16> to vector<144x256xbf16>
    %cst_54 = arith.constant dense<0.000000e+00> : vector<64x256xf32>
    %45 = tpu.matmul %42, %44, %cst_54 {dimension_numbers = #tpu.dot_dimension_numbers<[1], [0], [0], [1], [0, 0, 1, 1], [], []>} : vector<64x144xbf16>, vector<144x256xbf16>, vector<64x256xf32> -> vector<64x256xf32>
    %46 = arith.addf %40, %45 : vector<64x256xf32>
    %c0_55 = arith.constant 0 : index
    %c8 = arith.constant 8 : index
    %c0_56 = arith.constant 0 : index
    %c0_57 = arith.constant 0 : index
    %47 = vector.load %arg2[%c0_55, %c8, %c0_56, %c0_57] : memref<1x9x64x144xbf16, #tpu.memory_space<vmem>>, vector<1x1x64x144xbf16>
    %48 = vector.shape_cast %47 : vector<1x1x64x144xbf16> to vector<64x144xbf16>
    %c8_58 = arith.constant 8 : index
    %c0_59 = arith.constant 0 : index
    %c0_60 = arith.constant 0 : index
    %49 = vector.load %arg3[%c8_58, %c0_59, %c0_60] : memref<9x144x256xbf16, #tpu.memory_space<vmem>>, vector<1x144x256xbf16>
    %50 = vector.shape_cast %49 : vector<1x144x256xbf16> to vector<144x256xbf16>
    %cst_61 = arith.constant dense<0.000000e+00> : vector<64x256xf32>
    %51 = tpu.matmul %48, %50, %cst_61 {dimension_numbers = #tpu.dot_dimension_numbers<[1], [0], [0], [1], [0, 0, 1, 1], [], []>} : vector<64x144xbf16>, vector<144x256xbf16>, vector<64x256xf32> -> vector<64x256xf32>
    %52 = arith.addf %46, %51 : vector<64x256xf32>
    %c0_62 = arith.constant 0 : index
    %c0_63 = arith.constant 0 : index
    %53 = vector.load %arg5[%c0_62, %c0_63] : memref<1x256xf32, #tpu.memory_space<vmem>>, vector<1x256xf32>
    %54 = vector.broadcast %53 : vector<1x256xf32> to vector<64x256xf32>
    %55 = arith.mulf %52, %54 : vector<64x256xf32>
    %c0_64 = arith.constant 0 : index
    %c0_65 = arith.constant 0 : index
    %56 = vector.load %arg6[%c0_64, %c0_65] : memref<1x256xf32, #tpu.memory_space<vmem>>, vector<1x256xf32>
    %57 = vector.broadcast %56 : vector<1x256xf32> to vector<64x256xf32>
    %58 = arith.addf %55, %57 : vector<64x256xf32>
    %cst_66 = arith.constant 0.000000e+00 : f32
    %59 = vector.broadcast %cst_66 : f32 to vector<64x256xf32>
    %60 = arith.maximumf %58, %59 : vector<64x256xf32>
    %61 = arith.truncf %60 : vector<64x256xf32> to vector<64x256xbf16>
    %c0_67 = arith.constant 0 : index
    %c0_68 = arith.constant 0 : index
    %62 = vector.load %arg4[%c0_67, %c0_68] : memref<256x128xbf16, #tpu.memory_space<vmem>>, vector<256x128xbf16>
    %cst_69 = arith.constant dense<0.000000e+00> : vector<64x128xf32>
    %63 = tpu.matmul %61, %62, %cst_69 {dimension_numbers = #tpu.dot_dimension_numbers<[1], [0], [0], [1], [0, 0, 1, 1], [], []>} : vector<64x256xbf16>, vector<256x128xbf16>, vector<64x128xf32> -> vector<64x128xf32>
    %c0_70 = arith.constant 0 : index
    %c0_71 = arith.constant 0 : index
    %64 = vector.load %arg7[%c0_70, %c0_71] : memref<1x128xf32, #tpu.memory_space<vmem>>, vector<1x128xf32>
    %65 = vector.broadcast %64 : vector<1x128xf32> to vector<64x128xf32>
    %66 = arith.mulf %63, %65 : vector<64x128xf32>
    %c0_72 = arith.constant 0 : index
    %c0_73 = arith.constant 0 : index
    %67 = vector.load %arg8[%c0_72, %c0_73] : memref<1x128xf32, #tpu.memory_space<vmem>>, vector<1x128xf32>
    %68 = vector.broadcast %67 : vector<1x128xf32> to vector<64x128xf32>
    %69 = arith.addf %66, %68 : vector<64x128xf32>
    %c0_74 = arith.constant 0 : index
    %c0_75 = arith.constant 0 : index
    %c0_76 = arith.constant 0 : index
    %70 = vector.load %arg9[%c0_74, %c0_75, %c0_76] : memref<1x64x128xf32, #tpu.memory_space<vmem>>, vector<1x64x128xf32>
    %71 = vector.shape_cast %70 : vector<1x64x128xf32> to vector<64x128xf32>
    %72 = arith.addf %69, %71 : vector<64x128xf32>
    %c0_77 = arith.constant 0 : index
    %c0_78 = arith.constant 0 : index
    %c0_79 = arith.constant 0 : index
    %73 = vector.load %arg10[%c0_77, %c0_78, %c0_79] : memref<1x64x128xf32, #tpu.memory_space<vmem>>, vector<1x64x128xf32>
    %74 = vector.shape_cast %73 : vector<1x64x128xf32> to vector<64x128xf32>
    %75 = vector.shape_cast %72 : vector<64x128xf32> to vector<1x64x128xf32>
    tpu.vector_store %arg10[%c0_77, %c0_78, %c0_79], %75 {strides = array<i32>} : memref<1x64x128xf32, #tpu.memory_space<vmem>>, vector<1x64x128xf32>,
    return
  }
  func.func @transform_0(%arg0: i32, %arg1: i32) -> (i32, i32, i32, i32) {
    %c0_i32 = arith.constant 0 : i32
    %c0_i32_0 = arith.constant 0 : i32
    %c0_i32_1 = arith.constant 0 : i32
    return %arg0, %c0_i32, %arg1, %c0_i32_0 : i32, i32, i32, i32
  }
  func.func @transform_1(%arg0: i32, %arg1: i32) -> (i32, i32, i32) {
    %c0_i32 = arith.constant 0 : i32
    %c0_i32_0 = arith.constant 0 : i32
    %c0_i32_1 = arith.constant 0 : i32
    %c0_i32_2 = arith.constant 0 : i32
    return %c0_i32, %c0_i32_0, %c0_i32_1 : i32, i32, i32
  }
  func.func @transform_2(%arg0: i32, %arg1: i32) -> (i32, i32) {
    %c0_i32 = arith.constant 0 : i32
    %c0_i32_0 = arith.constant 0 : i32
    %c0_i32_1 = arith.constant 0 : i32
    return %c0_i32, %c0_i32_0 : i32, i32
  }
  func.func @transform_3(%arg0: i32, %arg1: i32) -> (i32, i32) {
    %c0_i32 = arith.constant 0 : i32
    %c0_i32_0 = arith.constant 0 : i32
    %c0_i32_1 = arith.constant 0 : i32
    return %c0_i32, %c0_i32_0 : i32, i32
  }
  func.func @transform_4(%arg0: i32, %arg1: i32) -> (i32, i32) {
    %c0_i32 = arith.constant 0 : i32
    %c0_i32_0 = arith.constant 0 : i32
    %c0_i32_1 = arith.constant 0 : i32
    return %c0_i32, %c0_i32_0 : i32, i32
  }
  func.func @transform_5(%arg0: i32, %arg1: i32) -> (i32, i32) {
    %c0_i32 = arith.constant 0 : i32
    %c0_i32_0 = arith.constant 0 : i32
    %c0_i32_1 = arith.constant 0 : i32
    return %c0_i32, %c0_i32_0 : i32, i32
  }
  func.func @transform_6(%arg0: i32, %arg1: i32) -> (i32, i32) {
    %c0_i32 = arith.constant 0 : i32
    %c0_i32_0 = arith.constant 0 : i32
    %c0_i32_1 = arith.constant 0 : i32
    return %c0_i32, %c0_i32_0 : i32, i32
  }
  func.func @transform_7(%arg0: i32, %arg1: i32) -> (i32, i32, i32) {
    %c0_i32 = arith.constant 0 : i32
    %c0_i32_0 = arith.constant 0 : i32
    return %arg0, %arg1, %c0_i32 : i32, i32, i32
  }
  func.func @transform_8(%arg0: i32, %arg1: i32) -> (i32, i32, i32) {
    %c0_i32 = arith.constant 0 : i32
    %c0_i32_0 = arith.constant 0 : i32
    return %arg0, %arg1, %c0_i32 : i32, i32, i32
  }
}

</mosaic_0001>

<bundles_post_ra>
// kernel: tpu_custom_call.1
= control target key start
LH: loop header
LB: loop body
LE: loop exit
PB: predicated region body
PF: predicated region fallthrough
CT: control target
= control target key end

     0   :  { %s5726_s0 = inlined_call_operand.vmem [shape: bf16[2,9,256,144], index: 0, kind: input, shape index: {}]   ;;  %s5727_s1 = inlined_call_operand.vmem [shape: bf16[9,144,256], index: 1, kind: input, shape index: {}]   ;;  %s5728_s2 = inlined_call_operand.vmem [shape: bf16[256,128], index: 2, kind: input, shape index: {}]   ;;  %s5729_s3 = inlined_call_operand.vmem [shape: f32[1,256], index: 3, kind: input, shape index: {}]   ;;  %s5730_s4 = inlined_call_operand.vmem [shape: f32[1,256], index: 4, kind: input, shape index: {}]   ;;  %s5731_s5 = inlined_call_operand.vmem [shape: f32[1,128], index: 5, kind: input, shape index: {}]   ;;  %s5732_s6 = inlined_call_operand.vmem [shape: f32[1,128], index: 6, kind: input, shape index: {}]   ;;  %s5733_s7 = inlined_call_operand.vmem [shape: f32[2,256,128], index: 7, kind: input, shape index: {}]   ;;  %s5734_s8 = inlined_call_operand.hbm [shape: f32[2,256,128], index: 8, kind: output, shape index: {}]  }
   0x1   :  { %5737 = sst [smem:[#allocation8_spill]] %s5726_s0 }
   0x2   :  { %13 = vsyncpa [#allocation4], 0 }
   0x3   :  { %15 = vsyncpa [#allocation4 + $0x1], 0  ;;  %s4659_s27 = smov 0   ;;  %s4661_s28 = smov 0  }
   0x4   :  { %s4663_s29 = smov 0   ;;  %s4665_s30 = smov 0  }
   0x5   :  { %s4667_s9 = smov 0   ;;  %s4669_s10 = smov 0  }
   0x6   :  { %s4671_s11 = smov 0   ;;  %s4673_s12 = smov 0  }
   0x7 LB: > { %s3389_s13 = sadd.s32 4294967295, %s4609_s12   ;;  %s3390_s14 = sadd.s32 4294967294, %s4609_s12   ;;  %s4609_s12 = sphi %s4673_s12, %s21_s12   ;;  %s4605_s11 = sphi %s4671_s11, %s5752_s11   ;;  %s4601_s10 = sphi %s4669_s10, %s5751_s10   ;;  %s4597_s9 = sphi %s4667_s9, %s5750_s9   ;;  %s4593_s30 = sphi %s4665_s30, %s5749_s30   ;;  %s4589_s29 = sphi %s4663_s29, %s5748_s29   ;;  %s4585_s28 = sphi %s4661_s28, %s5747_s28   ;;  %s4581_s27 = sphi %s4659_s27, %s5746_s27  }
   0x8   : > { %s30_s15 = sadd.s32 1, %s4601_s10  ;;  %s33_s16 = sadd.s32 1, %s4605_s11 }
   0x9   : > { %p31_p0 = scmp.ge.s32.totalorder %s30_s15, 4  ;;  %p49_p1 = scmp.ne.s32.totalorder %s4589_s29, %s4585_s28 }
   0xa   : > { %p50_p2 = scmp.eq.s32.totalorder %s4609_s12, 0  ;;  %p235_p5 = scmp.eq.s32.totalorder %s3389_s13, 7 }
   0xb   : > { %s5754_s15 = smov (%p31_p0, %s30_s15), 0  ;;  %s5756_s16 = smov (!%p31_p0, %s33_s16), %s4605_s11 }
   0xc   : > { %5738 = sst [smem:[#allocation6_spill]] %s5754_s15  ;;  %s38_s17 = ssub.s32 %s4601_s10, %s5754_s15 }
   0xd   : > { %p4711_p3 = por %p50_p2, %p49_p1  ;;  %p35_p4 = scmp.ge.s32.totalorder %s5756_s16, 2 }
   0xe   : > { %p240_p6 = scmp.ne.s32.totalorder %s4585_s28, %s4581_s27  ;;  %p241_p7 = scmp.eq.s32.totalorder %s3390_s14, 7 }
   0xf   : > { %s5758_s16 = smov (%p35_p4, %s5756_s16), 0  ;;  %p4719_p8 = por %p235_p5, %p49_p1 }
  0x10   : > { %5740 = sst [smem:[#allocation7_spill]] %s5758_s16  ;;  %p4723_p9 = por %p241_p7, %p240_p6 }
  0x11   : > { %s37_s21 = ssub.s32 %s4605_s11, %s5758_s16  ;;  %s42_s23 = sadd.s32 1, %s4589_s29 }
  0x12   : > { %s39_s22 = sor.u32 %s38_s17, %s37_s21  ;;  %p3392_p11 = scmp.ge.s32.totalorder %s4609_s12, 8 }
  0x13   : > { %p40_p10 = scmp.eq.s32.totalorder %s39_s22, 0 }
  0x14   : > { %275 = sbr.rel (%p3392_p11) target bundleno = 73 (0x49), region = 40 }
  0x15   : > { %s4731_s24 = scalar_select %p40_p10, %s4589_s29, %s42_s23  }
  0x1b   : > { %278 = sbr.rel (!%p4711_p3) target bundleno = 73 (0x49), region = 44  ;;  %s280_s25 = sand.u32 (%p4711_p3), 1, %s4589_s29  }
  0x1c   : > { %s4072_s26 = smul.u32 (%p4711_p3), 576, %s280_s25  ;;  %s3903_s13 = sshll.u32 (%p4711_p3), %s4601_s10, 4 }
  0x1d   : > { %s4073_s14 = smul.u32 (%p4711_p3), 576, %s4605_s11  ;;  %s5743_s0 = sld [smem:[#allocation8_spill]] (%p4711_p3) }
  0x1e   : > { %s4747_s18 = scalar_lea.vmem (%p4711_p3), [#allocation2], %s4072_s26 }
  0x1f   : > { %s286_s15 = sadd.s32 (%p4711_p3), %s4073_s14, %s3903_s13 }
  0x20   : > { %s3395_s16 = sshll.u32 (%p4711_p3), %s286_s15, 2 }
  0x23   : > { %s4742_s22 = scalar_lea.vmem %s5743_s0, %s3395_s16 }
  0x24   : > { %v458_v0 = vld [vmem:[%s4742_s22] sm:$0xff]  ;;  %v460_v1 = vld [vmem:[%s4742_s22 + $0x8] sm:$0xff]  ;;  %v462_v2 = vld [vmem:[%s4742_s22 + $0x10] sm:$0xff] }
  0x25   : > { %459 = vst [vmem:[%s4747_s18] sm:$0xff] %v458_v0  ;;  %461 = vst [vmem:[%s4747_s18 + $0x8] sm:$0xff] %v460_v1  ;;  %v464_v3 = vld [vmem:[%s4742_s22 + $0x18] sm:$0xff]  ;;  %v466_v4 = vld [vmem:[%s4742_s22 + $0x20] sm:$0xff] }
  0x26   : > { %463 = vst [vmem:[%s4747_s18 + $0x10] sm:$0xff] %v462_v2  ;;  %v468_v5 = vld [vmem:[%s4742_s22 + $0x28] sm:$0xff]  ;;  %465 = vst [vmem:[%s4747_s18 + $0x18] sm:$0xff] %v464_v3  ;;  %v470_v6 = vld [vmem:[%s4742_s22 + $0x30] sm:$0xff] }
  0x27   : > { %467 = vst [vmem:[%s4747_s18 + $0x20] sm:$0xff] %v466_v4  ;;  %469 = vst [vmem:[%s4747_s18 + $0x28] sm:$0xff] %v468_v5  ;;  %v472_v7 = vld [vmem:[%s4742_s22 + $0x38] sm:$0xff]  ;;  %v474_v8 = vld [vmem:[%s4742_s22 + $0x100] sm:$0xff] }
  0x28   : > { %471 = vst [vmem:[%s4747_s18 + $0x30] sm:$0xff] %v470_v6  ;;  %473 = vst [vmem:[%s4747_s18 + $0x38] sm:$0xff] %v472_v7  ;;  %v476_v9 = vld [vmem:[%s4742_s22 + $0x108] sm:$0xff]  ;;  %v478_v10 = vld [vmem:[%s4742_s22 + $0x110] sm:$0xff] }
  0x29   : > { %475 = vst [vmem:[%s4747_s18 + $0x40] sm:$0xff] %v474_v8  ;;  %v480_v11 = vld [vmem:[%s4742_s22 + $0x118] sm:$0xff]  ;;  %477 = vst [vmem:[%s4747_s18 + $0x48] sm:$0xff] %v476_v9  ;;  %v482_v12 = vld [vmem:[%s4742_s22 + $0x120] sm:$0xff] }
  0x2a   : > { %479 = vst [vmem:[%s4747_s18 + $0x50] sm:$0xff] %v478_v10  ;;  %481 = vst [vmem:[%s4747_s18 + $0x58] sm:$0xff] %v480_v11  ;;  %v484_v13 = vld [vmem:[%s4742_s22 + $0x128] sm:$0xff]  ;;  %v486_v14 = vld [vmem:[%s4742_s22 + $0x130] sm:$0xff] }
  0x2b   : > { %483 = vst [vmem:[%s4747_s18 + $0x60] sm:$0xff] %v482_v12  ;;  %485 = vst [vmem:[%s4747_s18 + $0x68] sm:$0xff] %v484_v13  ;;  %v488_v15 = vld [vmem:[%s4742_s22 + $0x138] sm:$0xff]  ;;  %v490_v16 = vld [vmem:[%s4742_s22 + $0x200] sm:$0xff] }
  0x2c   : > { %487 = vst [vmem:[%s4747_s18 + $0x70] sm:$0xff] %v486_v14  ;;  %v492_v17 = vld [vmem:[%s4742_s22 + $0x208] sm:$0xff]  ;;  %489 = vst [vmem:[%s4747_s18 + $0x78] sm:$0xff] %v488_v15  ;;  %v494_v18 = vld [vmem:[%s4742_s22 + $0x210] sm:$0xff] }
  0x2d   : > { %491 = vst [vmem:[%s4747_s18 + $0x80] sm:$0xff] %v490_v16  ;;  %493 = vst [vmem:[%s4747_s18 + $0x88] sm:$0xff] %v492_v17  ;;  %v496_v19 = vld [vmem:[%s4742_s22 + $0x218] sm:$0xff]  ;;  %v498_v20 = vld [vmem:[%s4742_s22 + $0x220] sm:$0xff] }
  0x2e   : > { %495 = vst [vmem:[%s4747_s18 + $0x90] sm:$0xff] %v494_v18  ;;  %497 = vst [vmem:[%s4747_s18 + $0x98] sm:$0xff] %v496_v19  ;;  %v500_v21 = vld [vmem:[%s4742_s22 + $0x228] sm:$0xff]  ;;  %v502_v22 = vld [vmem:[%s4742_s22 + $0x230] sm:$0xff] }
  0x2f   : > { %499 = vst [vmem:[%s4747_s18 + $0xa0] sm:$0xff] %v498_v20  ;;  %v504_v23 = vld [vmem:[%s4742_s22 + $0x238] sm:$0xff]  ;;  %501 = vst [vmem:[%s4747_s18 + $0xa8] sm:$0xff] %v500_v21  ;;  %v506_v24 = vld [vmem:[%s4742_s22 + $0x300] sm:$0xff] }
  0x30   : > { %503 = vst [vmem:[%s4747_s18 + $0xb0] sm:$0xff] %v502_v22  ;;  %505 = vst [vmem:[%s4747_s18 + $0xb8] sm:$0xff] %v504_v23  ;;  %v508_v25 = vld [vmem:[%s4742_s22 + $0x308] sm:$0xff]  ;;  %v510_v26 = vld [vmem:[%s4742_s22 + $0x310] sm:$0xff] }
  0x31   : > { %507 = vst [vmem:[%s4747_s18 + $0xc0] sm:$0xff] %v506_v24  ;;  %509 = vst [vmem:[%s4747_s18 + $0xc8] sm:$0xff] %v508_v25  ;;  %v512_v27 = vld [vmem:[%s4742_s22 + $0x318] sm:$0xff]  ;;  %v514_v28 = vld [vmem:[%s4742_s22 + $0x320] sm:$0xff] }
  0x32   : > { %511 = vst [vmem:[%s4747_s18 + $0xd0] sm:$0xff] %v510_v26  ;;  %v516_v29 = vld [vmem:[%s4742_s22 + $0x328] sm:$0xff]  ;;  %513 = vst [vmem:[%s4747_s18 + $0xd8] sm:$0xff] %v512_v27  ;;  %v518_v30 = vld [vmem:[%s4742_s22 + $0x330] sm:$0xff] }
  0x33   : > { %515 = vst [vmem:[%s4747_s18 + $0xe0] sm:$0xff] %v514_v28  ;;  %517 = vst [vmem:[%s4747_s18 + $0xe8] sm:$0xff] %v516_v29  ;;  %v520_v31 = vld [vmem:[%s4742_s22 + $0x338] sm:$0xff]  ;;  %v522_v32 = vld [vmem:[%s4742_s22 + $0x400] sm:$0xff] }
  0x34   : > { %519 = vst [vmem:[%s4747_s18 + $0xf0] sm:$0xff] %v518_v30  ;;  %521 = vst [vmem:[%s4747_s18 + $0xf8] sm:$0xff] %v520_v31  ;;  %v524_v33 = vld [vmem:[%s4742_s22 + $0x408] sm:$0xff]  ;;  %v526_v34 = vld [vmem:[%s4742_s22 + $0x410] sm:$0xff] }
  0x35   : > { %523 = vst [vmem:[%s4747_s18 + $0x100] sm:$0xff] %v522_v32  ;;  %v528_v35 = vld [vmem:[%s4742_s22 + $0x418] sm:$0xff]  ;;  %525 = vst [vmem:[%s4747_s18 + $0x108] sm:$0xff] %v524_v33  ;;  %v530_v36 = vld [vmem:[%s4742_s22 + $0x420] sm:$0xff] }
  0x36   : > { %527 = vst [vmem:[%s4747_s18 + $0x110] sm:$0xff] %v526_v34  ;;  %529 = vst [vmem:[%s4747_s18 + $0x118] sm:$0xff] %v528_v35  ;;  %v532_v37 = vld [vmem:[%s4742_s22 + $0x428] sm:$0xff]  ;;  %v534_v38 = vld [vmem:[%s4742_s22 + $0x430] sm:$0xff] }
  0x37   : > { %531 = vst [vmem:[%s4747_s18 + $0x120] sm:$0xff] %v530_v36  ;;  %533 = vst [vmem:[%s4747_s18 + $0x128] sm:$0xff] %v532_v37  ;;  %v536_v39 = vld [vmem:[%s4742_s22 + $0x438] sm:$0xff]  ;;  %v538_v40 = vld [vmem:[%s4742_s22 + $0x500] sm:$0xff] }
  0x38   : > { %535 = vst [vmem:[%s4747_s18 + $0x130] sm:$0xff] %v534_v38  ;;  %v540_v41 = vld [vmem:[%s4742_s22 + $0x508] sm:$0xff]  ;;  %537 = vst [vmem:[%s4747_s18 + $0x138] sm:$0xff] %v536_v39  ;;  %v542_v42 = vld [vmem:[%s4742_s22 + $0x510] sm:$0xff] }
  0x39   : > { %539 = vst [vmem:[%s4747_s18 + $0x140] sm:$0xff] %v538_v40  ;;  %541 = vst [vmem:[%s4747_s18 + $0x148] sm:$0xff] %v540_v41  ;;  %v544_v43 = vld [vmem:[%s4742_s22 + $0x518] sm:$0xff]  ;;  %v546_v44 = vld [vmem:[%s4742_s22 + $0x520] sm:$0xff] }
  0x3a   : > { %543 = vst [vmem:[%s4747_s18 + $0x150] sm:$0xff] %v542_v42  ;;  %545 = vst [vmem:[%s4747_s18 + $0x158] sm:$0xff] %v544_v43  ;;  %v548_v45 = vld [vmem:[%s4742_s22 + $0x528] sm:$0xff]  ;;  %v550_v46 = vld [vmem:[%s4742_s22 + $0x530] sm:$0xff] }
  0x3b   : > { %547 = vst [vmem:[%s4747_s18 + $0x160] sm:$0xff] %v546_v44  ;;  %v552_v47 = vld [vmem:[%s4742_s22 + $0x538] sm:$0xff]  ;;  %549 = vst [vmem:[%s4747_s18 + $0x168] sm:$0xff] %v548_v45  ;;  %v554_v48 = vld [vmem:[%s4742_s22 + $0x600] sm:$0xff] }
  0x3c   : > { %551 = vst [vmem:[%s4747_s18 + $0x170] sm:$0xff] %v550_v46  ;;  %553 = vst [vmem:[%s4747_s18 + $0x178] sm:$0xff] %v552_v47  ;;  %v556_v49 = vld [vmem:[%s4742_s22 + $0x608] sm:$0xff]  ;;  %v558_v50 = vld [vmem:[%s4742_s22 + $0x610] sm:$0xff] }
  0x3d   : > { %555 = vst [vmem:[%s4747_s18 + $0x180] sm:$0xff] %v554_v48  ;;  %557 = vst [vmem:[%s4747_s18 + $0x188] sm:$0xff] %v556_v49  ;;  %v560_v51 = vld [vmem:[%s4742_s22 + $0x618] sm:$0xff]  ;;  %v562_v52 = vld [vmem:[%s4742_s22 + $0x620] sm:$0xff] }
  0x3e   : > { %559 = vst [vmem:[%s4747_s18 + $0x190] sm:$0xff] %v558_v50  ;;  %v564_v53 = vld [vmem:[%s4742_s22 + $0x628] sm:$0xff]  ;;  %561 = vst [vmem:[%s4747_s18 + $0x198] sm:$0xff] %v560_v51  ;;  %v566_v54 = vld [vmem:[%s4742_s22 + $0x630] sm:$0xff] }
  0x3f   : > { %563 = vst [vmem:[%s4747_s18 + $0x1a0] sm:$0xff] %v562_v52  ;;  %565 = vst [vmem:[%s4747_s18 + $0x1a8] sm:$0xff] %v564_v53  ;;  %v568_v55 = vld [vmem:[%s4742_s22 + $0x638] sm:$0xff]  ;;  %v570_v56 = vld [vmem:[%s4742_s22 + $0x700] sm:$0xff] }
  0x40   : > { %567 = vst [vmem:[%s4747_s18 + $0x1b0] sm:$0xff] %v566_v54  ;;  %569 = vst [vmem:[%s4747_s18 + $0x1b8] sm:$0xff] %v568_v55  ;;  %v572_v57 = vld [vmem:[%s4742_s22 + $0x708] sm:$0xff]  ;;  %v574_v58 = vld [vmem:[%s4742_s22 + $0x710] sm:$0xff] }
  0x41   : > { %571 = vst [vmem:[%s4747_s18 + $0x1c0] sm:$0xff] %v570_v56  ;;  %v576_v59 = vld [vmem:[%s4742_s22 + $0x718] sm:$0xff]  ;;  %573 = vst [vmem:[%s4747_s18 + $0x1c8] sm:$0xff] %v572_v57  ;;  %v578_v60 = vld [vmem:[%s4742_s22 + $0x720] sm:$0xff] }
  0x42   : > { %575 = vst [vmem:[%s4747_s18 + $0x1d0] sm:$0xff] %v574_v58  ;;  %577 = vst [vmem:[%s4747_s18 + $0x1d8] sm:$0xff] %v576_v59  ;;  %v580_v61 = vld [vmem:[%s4742_s22 + $0x728] sm:$0xff]  ;;  %v582_v62 = vld [vmem:[%s4742_s22 + $0x730] sm:$0xff] }
  0x43   : > { %579 = vst [vmem:[%s4747_s18 + $0x1e0] sm:$0xff] %v578_v60  ;;  %581 = vst [vmem:[%s4747_s18 + $0x1e8] sm:$0xff] %v580_v61  ;;  %v584_v63 = vld [vmem:[%s4742_s22 + $0x738] sm:$0xff]  ;;  %v586_v0 = vld [vmem:[%s4742_s22 + $0x800] sm:$0xff] }
  0x44   : > { %583 = vst [vmem:[%s4747_s18 + $0x1f0] sm:$0xff] %v582_v62  ;;  %v588_v1 = vld [vmem:[%s4742_s22 + $0x808] sm:$0xff]  ;;  %585 = vst [vmem:[%s4747_s18 + $0x1f8] sm:$0xff] %v584_v63  ;;  %v590_v2 = vld [vmem:[%s4742_s22 + $0x810] sm:$0xff] }
  0x45   : > { %587 = vst [vmem:[%s4747_s18 + $0x200] sm:$0xff] %v586_v0  ;;  %589 = vst [vmem:[%s4747_s18 + $0x208] sm:$0xff] %v588_v1  ;;  %v592_v3 = vld [vmem:[%s4742_s22 + $0x818] sm:$0xff]  ;;  %v594_v4 = vld [vmem:[%s4742_s22 + $0x820] sm:$0xff] }
  0x46   : > { %591 = vst [vmem:[%s4747_s18 + $0x210] sm:$0xff] %v590_v2  ;;  %593 = vst [vmem:[%s4747_s18 + $0x218] sm:$0xff] %v592_v3  ;;  %v596_v5 = vld [vmem:[%s4742_s22 + $0x828] sm:$0xff]  ;;  %v598_v6 = vld [vmem:[%s4742_s22 + $0x830] sm:$0xff] }
  0x47   : > { %595 = vst [vmem:[%s4747_s18 + $0x220] sm:$0xff] %v594_v4  ;;  %v600_v7 = vld [vmem:[%s4742_s22 + $0x838] sm:$0xff]  ;;  %597 = vst [vmem:[%s4747_s18 + $0x228] sm:$0xff] %v596_v5 }
  0x48   : > { %599 = vst [vmem:[%s4747_s18 + $0x230] sm:$0xff] %v598_v6  ;;  %601 = vst [vmem:[%s4747_s18 + $0x238] sm:$0xff] %v600_v7 }
  0x49 PF: > { %p3396_p12 = scmp.ge.s32.totalorder %s4609_s12, 1  ;;  %p619_p13 = scmp.lt.s32.totalorder %s4609_s12, 9 }
  0x4b   : > { %p620_p0 = pnand %p3396_p12, %p619_p13 }
  0x4c   : > { %v4148_v8 = vld [vmem:[%s5727_s1 + $0x94] ss:$8 sps:$4 sm:$0xff] (!%p620_p0)   ;;  %v4150_v9 = vld [vmem:[%s5727_s1 + $0x244] ss:$8 sps:$4 sm:$0xff] (!%p620_p0)   ;;  %v4152_v10 = vld [vmem:[%s5727_s1 + $0x90] ss:$8 sps:$4 sm:$0xff] (!%p620_p0)  }
  0x4d   : > { %623 = sbr.rel (%p620_p0) target bundleno = 745 (0x2e9), region = 86  ;;  %874 = vmatprep.subr.bf16.mxu1 (!%p620_p0), %v4148_v8  ;;  %v4153_v11 = vld [vmem:[%s5727_s1 + $0x240] ss:$8 sps:$4 sm:$0xff] (!%p620_p0)   ;;  %1834 = vmatprep.subr.bf16.mxu0 (!%p620_p0), %v4150_v9  ;;  %v4154_v12 = vld [vmem:[%s5727_s1 + $0xa4] ss:$8 sps:$4 sm:$0xff] (!%p620_p0)   ;;  %s4953_s17 = sand.u32 (!%p620_p0), 1, %s4585_s28  }
  0x4e   : > { %875 = vmatpush1.bf16.msra.mxu1 (!%p620_p0), %v4152_v10  ;;  %1835 = vmatpush1.bf16.msra.mxu0 (!%p620_p0), %v4153_v11  ;;  %v4156_v13 = vld [vmem:[%s5727_s1 + $0x254] ss:$8 sps:$4 sm:$0xff] (!%p620_p0)   ;;  %v4158_v14 = vld [vmem:[%s5727_s1 + $0xa0] ss:$8 sps:$4 sm:$0xff] (!%p620_p0)   ;;  %v4159_v15 = vld [vmem:[%s5727_s1 + $0x250] ss:$8 sps:$4 sm:$0xff] (!%p620_p0)  }
  0x4f   : > { %876 = vmatprep.subr.bf16.mxu1 (!%p620_p0), %v4154_v12  ;;  %1836 = vmatprep.subr.bf16.mxu0 (!%p620_p0), %v4156_v13  ;;  %v4160_v16 = vld [vmem:[%s5727_s1 + $0xb4] ss:$8 sps:$4 sm:$0xff] (!%p620_p0)   ;;  %v4162_v17 = vld [vmem:[%s5727_s1 + $0x264] ss:$8 sps:$4 sm:$0xff] (!%p620_p0)   ;;  %v4164_v18 = vld [vmem:[%s5727_s1 + $0xb0] ss:$8 sps:$4 sm:$0xff] (!%p620_p0)  }
  0x50   : > { %v4165_v19 = vld [vmem:[%s5727_s1 + $0x260] ss:$8 sps:$4 sm:$0xff] (!%p620_p0)   ;;  %v4166_v20 = vld [vmem:[%s5727_s1 + $0xc4] ss:$8 sps:$4 sm:$0xff] (!%p620_p0)   ;;  %v4168_v21 = vld [vmem:[%s5727_s1 + $0x274] ss:$8 sps:$4 sm:$0xff] (!%p620_p0)  }
  0x51   : > { %v4170_v22 = vld [vmem:[%s5727_s1 + $0xc0] ss:$8 sps:$4 sm:$0xff] (!%p620_p0)   ;;  %v4171_v23 = vld [vmem:[%s5727_s1 + $0x270] ss:$8 sps:$4 sm:$0xff] (!%p620_p0)   ;;  %v4172_v24 = vld [vmem:[%s5727_s1 + $0xd4] ss:$8 sps:$4 sm:$0xff] (!%p620_p0)  }
  0x52   : > { %877 = vmatpush1.bf16.msra.mxu1 (!%p620_p0), %v4158_v14  ;;  %1837 = vmatpush1.bf16.msra.mxu0 (!%p620_p0), %v4159_v15  ;;  %v4174_v25 = vld [vmem:[%s5727_s1 + $0x284] ss:$8 sps:$4 sm:$0xff] (!%p620_p0)   ;;  %v4176_v26 = vld [vmem:[%s5727_s1 + $0xd0] ss:$8 sps:$4 sm:$0xff] (!%p620_p0)   ;;  %v4177_v27 = vld [vmem:[%s5727_s1 + $0x280] ss:$8 sps:$4 sm:$0xff] (!%p620_p0)  }
  0x53   : > { %878 = vmatprep.subr.bf16.mxu1 (!%p620_p0), %v4160_v16  ;;  %1838 = vmatprep.subr.bf16.mxu0 (!%p620_p0), %v4162_v17  ;;  %v4178_v28 = vld [vmem:[%s5727_s1 + $0xe4] ss:$8 sps:$4 sm:$0xff] (!%p620_p0)   ;;  %v4180_v29 = vld [vmem:[%s5727_s1 + $0x294] ss:$8 sps:$4 sm:$0xff] (!%p620_p0)   ;;  %s4074_s16 = smul.u32 (!%p620_p0), 576, %s4953_s17  ;;  %vm861_vm0 = vcmask (!%p620_p0), 130048  }
  0x54   : > { %v4182_v30 = vld [vmem:[%s5727_s1 + $0xe0] ss:$8 sps:$4 sm:$0xff]   ;;  %v4183_v31 = vld [vmem:[%s5727_s1 + $0x290] ss:$8 sps:$4 sm:$0xff]   ;;  %v4184_v32 = vld [vmem:[%s5727_s1 + $0xf4] ss:$8 sps:$4 sm:$0xff]  }
  0x55   : > { %v4186_v33 = vld [vmem:[%s5727_s1 + $0x2a4] ss:$8 sps:$4 sm:$0xff]   ;;  %v4188_v34 = vld [vmem:[%s5727_s1 + $0xf0] ss:$8 sps:$4 sm:$0xff]   ;;  %v4189_v35 = vld [vmem:[%s5727_s1 + $0x2a0] ss:$8 sps:$4 sm:$0xff]  }
  0x56   : > { %879 = vmatpush1.bf16.msra.mxu1 %v4164_v18  ;;  %1839 = vmatpush1.bf16.msra.mxu0 %v4165_v19  ;;  %v4190_v36 = vld [vmem:[%s5727_s1 + $0x104] ss:$8 sps:$4 sm:$0xff]   ;;  %v4192_v37 = vld [vmem:[%s5727_s1 + $0x2b4] ss:$8 sps:$4 sm:$0xff]   ;;  %s4986_s22 = scalar_lea.vmem [#allocation2], %s4074_s16  ;;  %s5608_s13 = sshll.u32 %s4593_s30, 3 }
  0x57   : > { %880 = vmatprep.subr.bf16.mxu1 %v4166_v20  ;;  %1840 = vmatprep.subr.bf16.mxu0 %v4168_v21  ;;  %v4204_v38 = vld [vmem:[%s4986_s22 + $0x44] ss:$8 sps:$4 sm:$0xff]   ;;  %v4194_v39 = vld [vmem:[%s5727_s1 + $0x100] ss:$8 sps:$4 sm:$0xff]   ;;  %v4195_v40 = vld [vmem:[%s5727_s1 + $0x2b0] ss:$8 sps:$4 sm:$0xff]  }
  0x58   : > { %3453 = vmatprep.mubr.msk.bf16.mxu1 %vm861_vm0, %v4204_v38  ;;  %v4210_v41 = vld [vmem:[%s4986_s22 + $0x104] ss:$8 sps:$4 sm:$0xff]   ;;  %v4196_v42 = vld [vmem:[%s5727_s1 + $0x114] ss:$8 sps:$4 sm:$0xff]   ;;  %v4200_v44 = vld [vmem:[%s5727_s1 + $0x110] ss:$8 sps:$4 sm:$0xff]  }
  0x59   : > { %v4198_v43 = vld [vmem:[%s5727_s1 + $0x2c4] ss:$8 sps:$4 sm:$0xff]   ;;  %3651 = vmatprep.mubr.msk.bf16.mxu0 %vm861_vm0, %v4210_v41  ;;  %v4201_v45 = vld [vmem:[%s5727_s1 + $0x2c0] ss:$8 sps:$4 sm:$0xff]   ;;  %v4213_v48 = vld [vmem:[%s5727_s1 + $0x2d4] ss:$8 sps:$4 sm:$0xff]  }
  0x5a   : > { %881 = vmatpush1.bf16.msra.mxu1 %v4170_v22  ;;  %1841 = vmatpush1.bf16.msra.mxu0 %v4171_v23  ;;  %v4207_v46 = vld [vmem:[%s5727_s1 + $0x4] ss:$8 sps:$4 sm:$0xff]   ;;  %v4202_v47 = vld [vmem:[%s4986_s22 + $0x40] ss:$8 sps:$4 sm:$0xff]   ;;  %v4211_v51 = vld [vmem:[%s5727_s1 + $0x2d0] ss:$8 sps:$4 sm:$0xff]  }
  0x5b   : > { %882 = vmatprep.subr.bf16.mxu1 %v4172_v24  ;;  %1842 = vmatprep.subr.bf16.mxu0 %v4174_v25  ;;  %v4205_v49 = vld [vmem:[%s5727_s1] ss:$8 sps:$4 sm:$0xff]   ;;  %v4216_v52 = vld [vmem:[%s5727_s1 + $0x14] ss:$8 sps:$4 sm:$0xff]   ;;  %v4219_v53 = vld [vmem:[%s5727_s1 + $0x2e4] ss:$8 sps:$4 sm:$0xff]  }
  0x5c   : > { %v4208_v50 = vld [vmem:[%s4986_s22 + $0x100] ss:$8 sps:$4 sm:$0xff]   ;;  %v4226_v54 = vld [vmem:[%s4986_s22 + $0x54] ss:$8 sps:$4 sm:$0xff]   ;;  %v4214_v56 = vld [vmem:[%s5727_s1 + $0x10] ss:$8 sps:$4 sm:$0xff]  }
  0x5d   : > { %v4231_v55 = vld [vmem:[%s4986_s22 + $0x114] ss:$8 sps:$4 sm:$0xff]   ;;  %v4217_v57 = vld [vmem:[%s5727_s1 + $0x2e0] ss:$8 sps:$4 sm:$0xff]   ;;  %v4222_v58 = vld [vmem:[%s5727_s1 + $0x24] ss:$8 sps:$4 sm:$0xff]  }
  0x5e   : > { %883 = vmatpush1.bf16.msra.mxu1 %v4176_v26  ;;  %1843 = vmatpush1.bf16.msra.mxu0 %v4177_v27  ;;  %v4225_v59 = vld [vmem:[%s5727_s1 + $0x2f4] ss:$8 sps:$4 sm:$0xff]   ;;  %v4220_v60 = vld [vmem:[%s5727_s1 + $0x20] ss:$8 sps:$4 sm:$0xff]   ;;  %v4223_v61 = vld [vmem:[%s5727_s1 + $0x2f0] ss:$8 sps:$4 sm:$0xff]  }
  0x5f   : > { %884 = vmatprep.subr.bf16.mxu1 %v4178_v28  ;;  %1844 = vmatprep.subr.bf16.mxu0 %v4180_v29  ;;  %v4236_v62 = vld [vmem:[%s4986_s22 + $0x50] ss:$8 sps:$4 sm:$0xff]   ;;  %v4230_v0 = vld [vmem:[%s5727_s1 + $0x34] ss:$8 sps:$4 sm:$0xff]   ;;  %v4235_v1 = vld [vmem:[%s5727_s1 + $0x304] ss:$8 sps:$4 sm:$0xff]  }
  0x60   : > { %v4237_v63 = vld [vmem:[%s4986_s22 + $0x110] ss:$8 sps:$4 sm:$0xff]   ;;  %v4244_v2 = vld [vmem:[%s4986_s22 + $0x64] ss:$8 sps:$4 sm:$0xff]   ;;  %v4233_v5 = vld [vmem:[%s5727_s1 + $0x300] ss:$8 sps:$4 sm:$0xff]  }
  0x61   : > { %v4249_v3 = vld [vmem:[%s4986_s22 + $0x124] ss:$8 sps:$4 sm:$0xff]   ;;  %v4228_v4 = vld [vmem:[%s5727_s1 + $0x30] ss:$8 sps:$4 sm:$0xff]   ;;  %v4243_v7 = vld [vmem:[%s5727_s1 + $0x314] ss:$8 sps:$4 sm:$0xff]  }
  0x62   : > { %885 = vmatpush1.bf16.msra.mxu1 %v4182_v30  ;;  %1845 = vmatpush1.bf16.msra.mxu0 %v4183_v31  ;;  %v4240_v6 = vld [vmem:[%s5727_s1 + $0x44] ss:$8 sps:$4 sm:$0xff]   ;;  %v4238_v8 = vld [vmem:[%s5727_s1 + $0x40] ss:$8 sps:$4 sm:$0xff]   ;;  %v4241_v9 = vld [vmem:[%s5727_s1 + $0x310] ss:$8 sps:$4 sm:$0xff]  }
  0x63   : > { %886 = vmatprep.subr.bf16.mxu1 %v4184_v32  ;;  %1846 = vmatprep.subr.bf16.mxu0 %v4186_v33  ;;  %v4254_v10 = vld [vmem:[%s4986_s22 + $0x60] ss:$8 sps:$4 sm:$0xff]   ;;  %v4248_v12 = vld [vmem:[%s5727_s1 + $0x54] ss:$8 sps:$4 sm:$0xff]   ;;  %v4253_v13 = vld [vmem:[%s5727_s1 + $0x324] ss:$8 sps:$4 sm:$0xff]  }
  0x64   : > { %v4255_v11 = vld [vmem:[%s4986_s22 + $0x120] ss:$8 sps:$4 sm:$0xff]   ;;  %v4262_v14 = vld [vmem:[%s4986_s22 + $0x74] ss:$8 sps:$4 sm:$0xff]   ;;  %v4246_v16 = vld [vmem:[%s5727_s1 + $0x50] ss:$8 sps:$4 sm:$0xff]  }
  0x65   : > { %v4267_v15 = vld [vmem:[%s4986_s22 + $0x134] ss:$8 sps:$4 sm:$0xff]   ;;  %v4251_v17 = vld [vmem:[%s5727_s1 + $0x320] ss:$8 sps:$4 sm:$0xff]   ;;  %v4258_v18 = vld [vmem:[%s5727_s1 + $0x64] ss:$8 sps:$4 sm:$0xff]  }
  0x66   : > { %887 = vmatpush1.bf16.msra.mxu1 %v4188_v34  ;;  %1847 = vmatpush1.bf16.msra.mxu0 %v4189_v35  ;;  %v4261_v19 = vld [vmem:[%s5727_s1 + $0x334] ss:$8 sps:$4 sm:$0xff]   ;;  %v4256_v20 = vld [vmem:[%s5727_s1 + $0x60] ss:$8 sps:$4 sm:$0xff]   ;;  %v4259_v21 = vld [vmem:[%s5727_s1 + $0x330] ss:$8 sps:$4 sm:$0xff]  }
  0x67   : > { %888 = vmatprep.subr.bf16.mxu1 %v4190_v36  ;;  %1848 = vmatprep.subr.bf16.mxu0 %v4192_v37  ;;  %v4272_v22 = vld [vmem:[%s4986_s22 + $0x70] ss:$8 sps:$4 sm:$0xff]   ;;  %v4266_v24 = vld [vmem:[%s5727_s1 + $0x74] ss:$8 sps:$4 sm:$0xff]   ;;  %v4271_v25 = vld [vmem:[%s5727_s1 + $0x344] ss:$8 sps:$4 sm:$0xff]  }
  0x68   : > { %v4273_v23 = vld [vmem:[%s4986_s22 + $0x130] ss:$8 sps:$4 sm:$0xff]   ;;  %v4282_v26 = vld [vmem:[%s4986_s22 + $0x4] ss:$8 sps:$4 sm:$0xff]   ;;  %v4269_v29 = vld [vmem:[%s5727_s1 + $0x340] ss:$8 sps:$4 sm:$0xff]  }
  0x69   : > { %v4288_v27 = vld [vmem:[%s4986_s22 + $0x144] ss:$8 sps:$4 sm:$0xff]   ;;  %v4264_v28 = vld [vmem:[%s5727_s1 + $0x70] ss:$8 sps:$4 sm:$0xff]   ;;  %v4279_v31 = vld [vmem:[%s5727_s1 + $0x354] ss:$8 sps:$4 sm:$0xff]  }
  0x6a   : > { %889 = vmatpush1.bf16.msra.mxu1 %v4194_v39  ;;  %1849 = vmatpush1.bf16.msra.mxu0 %v4195_v40  ;;  %v4276_v30 = vld [vmem:[%s5727_s1 + $0x84] ss:$8 sps:$4 sm:$0xff]   ;;  %v4274_v32 = vld [vmem:[%s5727_s1 + $0x80] ss:$8 sps:$4 sm:$0xff]   ;;  %v4277_v33 = vld [vmem:[%s5727_s1 + $0x350] ss:$8 sps:$4 sm:$0xff]  }
  0x6b   : > { %890 = vmatprep.subr.bf16.mxu1 %v4196_v42  ;;  %1850 = vmatprep.subr.bf16.mxu0 %v4198_v43  ;;  %v4285_v34 = vld [vmem:[%s5727_s1 + $0x124] ss:$8 sps:$4 sm:$0xff]   ;;  %v4280_v36 = vld [vmem:[%s4986_s22] ss:$8 sps:$4 sm:$0xff]   ;;  %v4294_v40 = vld [vmem:[%s5727_s1 + $0x134] ss:$8 sps:$4 sm:$0xff]  }
  0x6c   : > { %v4291_v35 = vld [vmem:[%s5727_s1 + $0x364] ss:$8 sps:$4 sm:$0xff]   ;;  %v4283_v37 = vld [vmem:[%s5727_s1 + $0x120] ss:$8 sps:$4 sm:$0xff]   ;;  %v4297_v41 = vld [vmem:[%s5727_s1 + $0x374] ss:$8 sps:$4 sm:$0xff]  }
  0x6d   : > { %v4286_v38 = vld [vmem:[%s4986_s22 + $0x140] ss:$8 sps:$4 sm:$0xff]   ;;  %v4304_v42 = vld [vmem:[%s4986_s22 + $0x14] ss:$8 sps:$4 sm:$0xff]   ;;  %p670_p1 = scmp.lt.s32.totalorder %s4597_s9, 1  ;;  %p672_p2 = scmp.lt.s32.totalorder %s5608_s13, 31 }
  0x6e   : > { %891 = vmatpush1.bf16.msra.mxu1 %v4200_v44  ;;  %1851 = vmatpush1.bf16.msra.mxu0 %v4201_v45  ;;  %v4289_v39 = vld [vmem:[%s5727_s1 + $0x360] ss:$8 sps:$4 sm:$0xff]   ;;  %v4309_v43 = vld [vmem:[%s4986_s22 + $0x154] ss:$8 sps:$4 sm:$0xff]   ;;  %v4292_v44 = vld [vmem:[%s5727_s1 + $0x130] ss:$8 sps:$4 sm:$0xff]  }
  0x6f   : > { %1085 = vmatprep.subr.bf16.mxu1 %v4207_v46  ;;  %2089 = vmatprep.subr.bf16.mxu0 %v4213_v48  ;;  %v4295_v45 = vld [vmem:[%s5727_s1 + $0x370] ss:$8 sps:$4 sm:$0xff]   ;;  %v4300_v46 = vld [vmem:[%s5727_s1 + $0x144] ss:$8 sps:$4 sm:$0xff]   ;;  %v4298_v48 = vld [vmem:[%s5727_s1 + $0x140] ss:$8 sps:$4 sm:$0xff]  }
  0x70   : > { %s671_s14 = scalar_select %p670_p1, %s4597_s9, 1 }
  0x71   : > { %907 = vmatmul.mubr.bf16.vlgmr.msra.gmra.mrb[0].mxu1 %v4202_v47  ;;  %1867 = vmatmul.mubr.bf16.vlgmr.msra.gmra.mrb[0].mxu0 %v4208_v50  ;;  %v4303_v47 = vld [vmem:[%s5727_s1 + $0x384] ss:$8 sps:$4 sm:$0xff]   ;;  %v4315_v50 = vld [vmem:[%s4986_s22 + $0x150] ss:$8 sps:$4 sm:$0xff]   ;;  %s673_s21 = scalar_select %p672_p2, %s5608_s13, 31 }
  0x72   : > { %1086 = vmatpush1.bf16.msra.mxu1 %v4205_v49  ;;  %2090 = vmatpush1.bf16.msra.mxu0 %v4211_v51  ;;  %v4314_v49 = vld [vmem:[%s4986_s22 + $0x10] ss:$8 sps:$4 sm:$0xff]   ;;  %v4301_v51 = vld [vmem:[%s5727_s1 + $0x380] ss:$8 sps:$4 sm:$0xff]   ;;  %s3399_s0 = sshll.u32 %s671_s14, 5  ;;  %s3271_s30 = scalar_lea.sflag [#allocation4], %s4953_s17 }
  0x73   : > { %1087 = vmatprep.subr.bf16.mxu1 %v4216_v52  ;;  %2091 = vmatprep.subr.bf16.mxu0 %v4219_v53  ;;  %v4308_v52 = vld [vmem:[%s5727_s1 + $0x154] ss:$8 sps:$4 sm:$0xff]   ;;  %s675_s18 = sadd.s32 %s3399_s0, %s673_s21  ;;  %s3397_s21 = sshll.u32 %s4953_s17, 6 }
  0x74   : > { %3454 = vmatprep.mubr.msk.bf16.mxu1 %vm861_vm0, %v4226_v54  ;;  %3652 = vmatprep.mubr.msk.bf16.mxu0 %vm861_vm0, %v4231_v55  ;;  %v4313_v53 = vld [vmem:[%s5727_s1 + $0x394] ss:$8 sps:$4 sm:$0xff]   ;;  %v4322_v54 = vld [vmem:[%s4986_s22 + $0x24] ss:$8 sps:$4 sm:$0xff]   ;;  %s5636_s0 = scalar_lea.vmem [#allocation3], %s3397_s21 }
  0x75   : > { %v4327_v55 = vld [vmem:[%s4986_s22 + $0x164] ss:$8 sps:$4 sm:$0xff]  }
  0x76   : > { %1088 = vmatpush1.bf16.msra.mxu1 %v4214_v56  ;;  %2092 = vmatpush1.bf16.msra.mxu0 %v4217_v57  ;;  %v4306_v56 = vld [vmem:[%s5727_s1 + $0x150] ss:$8 sps:$4 sm:$0xff]  }
  0x77   : > { %1089 = vmatprep.subr.bf16.mxu1 %v4222_v58  ;;  %2093 = vmatprep.subr.bf16.mxu0 %v4225_v59  ;;  %v4311_v57 = vld [vmem:[%s5727_s1 + $0x390] ss:$8 sps:$4 sm:$0xff]   ;;  %v4318_v58 = vld [vmem:[%s5727_s1 + $0x164] ss:$8 sps:$4 sm:$0xff]  }
  0x78   : > { %v4321_v59 = vld [vmem:[%s5727_s1 + $0x3a4] ss:$8 sps:$4 sm:$0xff]  }
  0x79   : > { %917 = vmatmul.mubr.bf16.gmra.mrb[4].mxu1 %v4236_v62  ;;  %1877 = vmatmul.mubr.bf16.gmra.mrb[4].mxu0 %v4237_v63  ;;  %v4333_v62 = vld [vmem:[%s4986_s22 + $0x160] ss:$8 sps:$4 sm:$0xff]  }
  0x7a   : > { %1090 = vmatpush1.bf16.msra.mxu1 %v4220_v60  ;;  %2094 = vmatpush1.bf16.msra.mxu0 %v4223_v61  ;;  %v4316_v60 = vld [vmem:[%s5727_s1 + $0x160] ss:$8 sps:$4 sm:$0xff]  }
  0x7b   : > { %1091 = vmatprep.subr.bf16.mxu1 %v4230_v0  ;;  %2095 = vmatprep.subr.bf16.mxu0 %v4235_v1  ;;  %v4332_v61 = vld [vmem:[%s4986_s22 + $0x20] ss:$8 sps:$4 sm:$0xff]   ;;  %v4326_v0 = vld [vmem:[%s5727_s1 + $0x174] ss:$8 sps:$4 sm:$0xff]  }
  0x7c   : > { %3455 = vmatprep.mubr.msk.bf16.mxu1 %vm861_vm0, %v4244_v2  ;;  %3653 = vmatprep.mubr.msk.bf16.mxu0 %vm861_vm0, %v4249_v3  ;;  %v4319_v63 = vld [vmem:[%s5727_s1 + $0x3a0] ss:$8 sps:$4 sm:$0xff]   ;;  %v4331_v1 = vld [vmem:[%s5727_s1 + $0x3b4] ss:$8 sps:$4 sm:$0xff]  }
  0x7d   : > { %v4340_v2 = vld [vmem:[%s4986_s22 + $0x34] ss:$8 sps:$4 sm:$0xff]  }
  0x7e   : > { %1092 = vmatpush1.bf16.msra.mxu1 %v4228_v4  ;;  %2096 = vmatpush1.bf16.msra.mxu0 %v4233_v5  ;;  %v4345_v3 = vld [vmem:[%s4986_s22 + $0x174] ss:$8 sps:$4 sm:$0xff]   ;;  %v4324_v4 = vld [vmem:[%s5727_s1 + $0x170] ss:$8 sps:$4 sm:$0xff]  }
  0x7f   : > { %1093 = vmatprep.subr.bf16.mxu1 %v4240_v6  ;;  %2097 = vmatprep.subr.bf16.mxu0 %v4243_v7  ;;  %v4329_v5 = vld [vmem:[%s5727_s1 + $0x3b0] ss:$8 sps:$4 sm:$0xff]   ;;  %v4336_v6 = vld [vmem:[%s5727_s1 + $0x184] ss:$8 sps:$4 sm:$0xff]  }
  0x80   : > { %v4339_v7 = vld [vmem:[%s5727_s1 + $0x3c4] ss:$8 sps:$4 sm:$0xff]  }
  0x81   : > { %927 = vmatmul.mubr.bf16.gmra.mrb[8].mxu1 %v4254_v10  ;;  %1887 = vmatmul.mubr.bf16.gmra.mrb[8].mxu0 %v4255_v11  ;;  %v4350_v10 = vld [vmem:[%s4986_s22 + $0x30] ss:$8 sps:$4 sm:$0xff]  }
  0x82   : > { %1094 = vmatpush1.bf16.msra.mxu1 %v4238_v8  ;;  %2098 = vmatpush1.bf16.msra.mxu0 %v4241_v9  ;;  %v4334_v8 = vld [vmem:[%s5727_s1 + $0x180] ss:$8 sps:$4 sm:$0xff]   ;;  %v4351_v11 = vld [vmem:[%s4986_s22 + $0x170] ss:$8 sps:$4 sm:$0xff]  }
  0x83   : > { %1095 = vmatprep.subr.bf16.mxu1 %v4248_v12  ;;  %2099 = vmatprep.subr.bf16.mxu0 %v4253_v13  ;;  %v4337_v9 = vld [vmem:[%s5727_s1 + $0x3c0] ss:$8 sps:$4 sm:$0xff]   ;;  %v4344_v12 = vld [vmem:[%s5727_s1 + $0x194] ss:$8 sps:$4 sm:$0xff]  }
  0x84   : > { %3456 = vmatprep.mubr.msk.bf16.mxu1 %vm861_vm0, %v4262_v14  ;;  %3654 = vmatprep.mubr.msk.bf16.mxu0 %vm861_vm0, %v4267_v15  ;;  %v4349_v13 = vld [vmem:[%s5727_s1 + $0x3d4] ss:$8 sps:$4 sm:$0xff]   ;;  %v4360_v14 = vld [vmem:[%s4986_s22 + $0x84] ss:$8 sps:$4 sm:$0xff]  }
  0x85   : > { %v4366_v15 = vld [vmem:[%s4986_s22 + $0x184] ss:$8 sps:$4 sm:$0xff]  }
  0x86   : > { %1096 = vmatpush1.bf16.msra.mxu1 %v4246_v16  ;;  %2100 = vmatpush1.bf16.msra.mxu0 %v4251_v17  ;;  %v4342_v16 = vld [vmem:[%s5727_s1 + $0x190] ss:$8 sps:$4 sm:$0xff]  }
  0x87   : > { %1097 = vmatprep.subr.bf16.mxu1 %v4258_v18  ;;  %2101 = vmatprep.subr.bf16.mxu0 %v4261_v19  ;;  %v4347_v17 = vld [vmem:[%s5727_s1 + $0x3d0] ss:$8 sps:$4 sm:$0xff]   ;;  %v4354_v18 = vld [vmem:[%s5727_s1 + $0x1a4] ss:$8 sps:$4 sm:$0xff]  }
  0x88   : > { %v4357_v19 = vld [vmem:[%s5727_s1 + $0x3e4] ss:$8 sps:$4 sm:$0xff]  }
  0x89   : > { %937 = vmatmul.mubr.bf16.gmra.mrb[12].mxu1 %v4272_v22  ;;  %1897 = vmatmul.mubr.bf16.gmra.mrb[12].mxu0 %v4273_v23  ;;  %v4363_v22 = vld [vmem:[%s5727_s1 + $0x1b4] ss:$8 sps:$4 sm:$0xff]  }
  0x8a   : > { %1098 = vmatpush1.bf16.msra.mxu1 %v4256_v20  ;;  %2102 = vmatpush1.bf16.msra.mxu0 %v4259_v21  ;;  %v4352_v20 = vld [vmem:[%s5727_s1 + $0x1a0] ss:$8 sps:$4 sm:$0xff]   ;;  %v4369_v23 = vld [vmem:[%s5727_s1 + $0x3f4] ss:$8 sps:$4 sm:$0xff]  }
  0x8b   : > { %1099 = vmatprep.subr.bf16.mxu1 %v4266_v24  ;;  %2103 = vmatprep.subr.bf16.mxu0 %v4271_v25  ;;  %v4355_v21 = vld [vmem:[%s5727_s1 + $0x3e0] ss:$8 sps:$4 sm:$0xff]   ;;  %v4361_v25 = vld [vmem:[%s5727_s1 + $0x1b0] ss:$8 sps:$4 sm:$0xff]  }
  0x8c   : > { %3483 = vmatprep.mubr.msk.bf16.mxu1 %vm861_vm0, %v4282_v26  ;;  %3707 = vmatprep.mubr.msk.bf16.mxu0 %vm861_vm0, %v4288_v27  ;;  %v4358_v24 = vld [vmem:[%s4986_s22 + $0x80] ss:$8 sps:$4 sm:$0xff]   ;;  %v4367_v27 = vld [vmem:[%s5727_s1 + $0x3f0] ss:$8 sps:$4 sm:$0xff]  }
  0x8d   : > { %v4364_v26 = vld [vmem:[%s4986_s22 + $0x180] ss:$8 sps:$4 sm:$0xff]  }
  0x8e   : > { %1100 = vmatpush1.bf16.msra.mxu1 %v4264_v28  ;;  %2104 = vmatpush1.bf16.msra.mxu0 %v4269_v29  ;;  %v4372_v28 = vld [vmem:[%s5727_s1 + $0x1c4] ss:$8 sps:$4 sm:$0xff]  }
  0x8f   : > { %1101 = vmatprep.subr.bf16.mxu1 %v4276_v30  ;;  %2105 = vmatprep.subr.bf16.mxu0 %v4279_v31  ;;  %v4375_v29 = vld [vmem:[%s5727_s1 + $0x404] ss:$8 sps:$4 sm:$0xff]   ;;  %v4382_v30 = vld [vmem:[%s4986_s22 + $0x94] ss:$8 sps:$4 sm:$0xff]  }
  0x90   : > { %v4388_v31 = vld [vmem:[%s4986_s22 + $0x194] ss:$8 sps:$4 sm:$0xff]  }
  0x92   : > { %1102 = vmatpush1.bf16.msra.mxu1 %v4274_v32  ;;  %2106 = vmatpush1.bf16.msra.mxu0 %v4277_v33  ;;  %v4370_v32 = vld [vmem:[%s5727_s1 + $0x1c0] ss:$8 sps:$4 sm:$0xff]  }
  0x93   : > { %1324 = vmatprep.subr.bf16.mxu1 %v4285_v34  ;;  %2344 = vmatprep.subr.bf16.mxu0 %v4291_v35  ;;  %v4373_v33 = vld [vmem:[%s5727_s1 + $0x400] ss:$8 sps:$4 sm:$0xff]   ;;  %v4378_v34 = vld [vmem:[%s5727_s1 + $0x1d4] ss:$8 sps:$4 sm:$0xff]  }
  0x94   : > { %v4381_v35 = vld [vmem:[%s5727_s1 + $0x414] ss:$8 sps:$4 sm:$0xff]  }
  0x95   : > { %1118 = vmatmul.mubr.bf16.vlgmr.msra.gmra.mrb[0].mxu1 %v4280_v36  ;;  %2122 = vmatmul.mubr.bf16.vlgmr.msra.gmra.mrb[0].mxu0 %v4286_v38  ;;  %v4376_v36 = vld [vmem:[%s5727_s1 + $0x1d0] ss:$8 sps:$4 sm:$0xff]  }
  0x96   : > { %1325 = vmatpush1.bf16.msra.mxu1 %v4283_v37  ;;  %2345 = vmatpush1.bf16.msra.mxu0 %v4289_v39  ;;  %v4384_v37 = vld [vmem:[%s4986_s22 + $0x90] ss:$8 sps:$4 sm:$0xff]  }
  0x97   : > { %1326 = vmatprep.subr.bf16.mxu1 %v4294_v40  ;;  %2346 = vmatprep.subr.bf16.mxu0 %v4297_v41  ;;  %v4393_v38 = vld [vmem:[%s4986_s22 + $0x190] ss:$8 sps:$4 sm:$0xff]   ;;  %v4387_v40 = vld [vmem:[%s5727_s1 + $0x1e4] ss:$8 sps:$4 sm:$0xff]  }
  0x98   : > { %3484 = vmatprep.mubr.msk.bf16.mxu1 %vm861_vm0, %v4304_v42  ;;  %3708 = vmatprep.mubr.msk.bf16.mxu0 %vm861_vm0, %v4309_v43  ;;  %v4379_v39 = vld [vmem:[%s5727_s1 + $0x410] ss:$8 sps:$4 sm:$0xff]   ;;  %v4392_v41 = vld [vmem:[%s5727_s1 + $0x424] ss:$8 sps:$4 sm:$0xff]  }
  0x99   : > { %v4400_v42 = vld [vmem:[%s4986_s22 + $0xa4] ss:$8 sps:$4 sm:$0xff]  }
  0x9a   : > { %1327 = vmatpush1.bf16.msra.mxu1 %v4292_v44  ;;  %2347 = vmatpush1.bf16.msra.mxu0 %v4295_v45  ;;  %v4406_v43 = vld [vmem:[%s4986_s22 + $0x1a4] ss:$8 sps:$4 sm:$0xff]   ;;  %v4385_v44 = vld [vmem:[%s5727_s1 + $0x1e0] ss:$8 sps:$4 sm:$0xff]  }
  0x9b   : > { %1328 = vmatprep.subr.bf16.mxu1 %v4300_v46  ;;  %2348 = vmatprep.subr.bf16.mxu0 %v4303_v47  ;;  %v4390_v45 = vld [vmem:[%s5727_s1 + $0x420] ss:$8 sps:$4 sm:$0xff]   ;;  %v4396_v46 = vld [vmem:[%s5727_s1 + $0x1f4] ss:$8 sps:$4 sm:$0xff]  }
  0x9c   : > { %v4399_v47 = vld [vmem:[%s5727_s1 + $0x434] ss:$8 sps:$4 sm:$0xff]  }
  0x9d   : > { %1128 = vmatmul.mubr.bf16.gmra.mrb[4].mxu1 %v4314_v49  ;;  %2132 = vmatmul.mubr.bf16.gmra.mrb[4].mxu0 %v4315_v50  ;;  %v4402_v49 = vld [vmem:[%s4986_s22 + $0xa0] ss:$8 sps:$4 sm:$0xff]  }
  0x9e   : > { %1329 = vmatpush1.bf16.msra.mxu1 %v4298_v48  ;;  %2349 = vmatpush1.bf16.msra.mxu0 %v4301_v51  ;;  %v4394_v48 = vld [vmem:[%s5727_s1 + $0x1f0] ss:$8 sps:$4 sm:$0xff]   ;;  %v4411_v50 = vld [vmem:[%s4986_s22 + $0x1a0] ss:$8 sps:$4 sm:$0xff]  }
  0x9f   : > { %1330 = vmatprep.subr.bf16.mxu1 %v4308_v52  ;;  %2350 = vmatprep.subr.bf16.mxu0 %v4313_v53  ;;  %v4397_v51 = vld [vmem:[%s5727_s1 + $0x430] ss:$8 sps:$4 sm:$0xff]   ;;  %v4405_v52 = vld [vmem:[%s5727_s1 + $0x204] ss:$8 sps:$4 sm:$0xff]  }
  0xa0   : > { %3485 = vmatprep.mubr.msk.bf16.mxu1 %vm861_vm0, %v4322_v54  ;;  %3709 = vmatprep.mubr.msk.bf16.mxu0 %vm861_vm0, %v4327_v55  ;;  %v4410_v53 = vld [vmem:[%s5727_s1 + $0x444] ss:$8 sps:$4 sm:$0xff]   ;;  %v4418_v54 = vld [vmem:[%s4986_s22 + $0xb4] ss:$8 sps:$4 sm:$0xff]  }
  0xa1   : > { %v4424_v55 = vld [vmem:[%s4986_s22 + $0x1b4] ss:$8 sps:$4 sm:$0xff]  }
  0xa2   : > { %1331 = vmatpush1.bf16.msra.mxu1 %v4306_v56  ;;  %2351 = vmatpush1.bf16.msra.mxu0 %v4311_v57  ;;  %v4403_v56 = vld [vmem:[%s5727_s1 + $0x200] ss:$8 sps:$4 sm:$0xff]  }
  0xa3   : > { %1332 = vmatprep.subr.bf16.mxu1 %v4318_v58  ;;  %2352 = vmatprep.subr.bf16.mxu0 %v4321_v59  ;;  %v4408_v57 = vld [vmem:[%s5727_s1 + $0x440] ss:$8 sps:$4 sm:$0xff]   ;;  %v4414_v58 = vld [vmem:[%s5727_s1 + $0x214] ss:$8 sps:$4 sm:$0xff]  }
  0xa4   : > { %v4417_v59 = vld [vmem:[%s5727_s1 + $0x454] ss:$8 sps:$4 sm:$0xff]  }
  0xa5   : > { %1138 = vmatmul.mubr.bf16.gmra.mrb[8].mxu1 %v4332_v61  ;;  %2142 = vmatmul.mubr.bf16.gmra.mrb[8].mxu0 %v4333_v62  ;;  %v4415_v61 = vld [vmem:[%s5727_s1 + $0x450] ss:$8 sps:$4 sm:$0xff]  }
  0xa6   : > { %1333 = vmatpush1.bf16.msra.mxu1 %v4316_v60  ;;  %2353 = vmatpush1.bf16.msra.mxu0 %v4319_v63  ;;  %v4412_v60 = vld [vmem:[%s5727_s1 + $0x210] ss:$8 sps:$4 sm:$0xff]  }
  0xa7   : > { %1334 = vmatprep.subr.bf16.mxu1 %v4326_v0  ;;  %2354 = vmatprep.subr.bf16.mxu0 %v4331_v1  ;;  %v4420_v62 = vld [vmem:[%s4986_s22 + $0xb0] ss:$8 sps:$4 sm:$0xff]   ;;  %v4423_v0 = vld [vmem:[%s5727_s1 + $0x224] ss:$8 sps:$4 sm:$0xff]  }
  0xa8   : > { %3486 = vmatprep.mubr.msk.bf16.mxu1 %vm861_vm0, %v4340_v2  ;;  %3710 = vmatprep.mubr.msk.bf16.mxu0 %vm861_vm0, %v4345_v3  ;;  %v4429_v63 = vld [vmem:[%s4986_s22 + $0x1b0] ss:$8 sps:$4 sm:$0xff]   ;;  %v4428_v1 = vld [vmem:[%s5727_s1 + $0x464] ss:$8 sps:$4 sm:$0xff]  }
  0xa9   : > { %v4438_v2 = vld [vmem:[%s4986_s22 + $0xc4] ss:$8 sps:$4 sm:$0xff]  }
  0xaa   : > { %1335 = vmatpush1.bf16.msra.mxu1 %v4324_v4  ;;  %2355 = vmatpush1.bf16.msra.mxu0 %v4329_v5  ;;  %v4441_v3 = vld [vmem:[%s4986_s22 + $0x1c4] ss:$8 sps:$4 sm:$0xff]   ;;  %v4421_v4 = vld [vmem:[%s5727_s1 + $0x220] ss:$8 sps:$4 sm:$0xff]  }
  0xab   : > { %1336 = vmatprep.subr.bf16.mxu1 %v4336_v6  ;;  %2356 = vmatprep.subr.bf16.mxu0 %v4339_v7  ;;  %v4426_v5 = vld [vmem:[%s5727_s1 + $0x460] ss:$8 sps:$4 sm:$0xff]   ;;  %v4432_v6 = vld [vmem:[%s5727_s1 + $0x234] ss:$8 sps:$4 sm:$0xff]  }
  0xac   : > { %v4435_v7 = vld [vmem:[%s5727_s1 + $0x474] ss:$8 sps:$4 sm:$0xff]  }
  0xad   : > { %1148 = vmatmul.mubr.bf16.gmra.mrb[12].mxu1 %v4350_v10  ;;  %2152 = vmatmul.mubr.bf16.gmra.mrb[12].mxu0 %v4351_v11  ;;  %v4444_v10 = vld [vmem:[%s5727_s1 + $0x484] ss:$8 sps:$4 sm:$0xff]   ;;  %v4436_v11 = vld [vmem:[%s4986_s22 + $0xc0] ss:$8 sps:$4 sm:$0xff]  }
  0xae   : > { %1337 = vmatpush1.bf16.msra.mxu1 %v4334_v8  ;;  %2357 = vmatpush1.bf16.msra.mxu0 %v4337_v9  ;;  %v4430_v8 = vld [vmem:[%s5727_s1 + $0x230] ss:$8 sps:$4 sm:$0xff]  }
  0xaf   : > { %1338 = vmatprep.subr.bf16.mxu1 %v4344_v12  ;;  %2358 = vmatprep.subr.bf16.mxu0 %v4349_v13  ;;  %v4433_v9 = vld [vmem:[%s5727_s1 + $0x470] ss:$8 sps:$4 sm:$0xff]   ;;  %v4439_v12 = vld [vmem:[%s4986_s22 + $0x1c0] ss:$8 sps:$4 sm:$0xff]  }
  0xb0   : > { %3539 = vmatprep.mubr.msk.bf16.mxu1 %vm861_vm0, %v4360_v14  ;;  %3763 = vmatprep.mubr.msk.bf16.mxu0 %vm861_vm0, %v4366_v15  ;;  %v4442_v13 = vld [vmem:[%s5727_s1 + $0x480] ss:$8 sps:$4 sm:$0xff]   ;;  %v4447_v14 = vld [vmem:[%s5727_s1 + $0x494] ss:$8 sps:$4 sm:$0xff]  }
  0xb1   : > { %v4448_v15 = vld [vmem:[%s4986_s22 + $0xd4] ss:$8 sps:$4 sm:$0xff]  }
  0xb2   : > { %1339 = vmatpush1.bf16.msra.mxu1 %v4342_v16  ;;  %2359 = vmatpush1.bf16.msra.mxu0 %v4347_v17  ;;  %v4454_v16 = vld [vmem:[%s4986_s22 + $0x1d4] ss:$8 sps:$4 sm:$0xff]   ;;  %v4445_v17 = vld [vmem:[%s5727_s1 + $0x490] ss:$8 sps:$4 sm:$0xff]  }
  0xb3   : > { %1340 = vmatprep.subr.bf16.mxu1 %v4354_v18  ;;  %2360 = vmatprep.subr.bf16.mxu0 %v4357_v19  ;;  %v4453_v18 = vld [vmem:[%s5727_s1 + $0x4a4] ss:$8 sps:$4 sm:$0xff]   ;;  %v4450_v19 = vld [vmem:[%s4986_s22 + $0xd0] ss:$8 sps:$4 sm:$0xff]  }
  0xb6   : > { %1341 = vmatpush1.bf16.msra.mxu1 %v4352_v20  ;;  %2361 = vmatpush1.bf16.msra.mxu0 %v4355_v21  ;;  %v4451_v20 = vld [vmem:[%s5727_s1 + $0x4a0] ss:$8 sps:$4 sm:$0xff]   ;;  %v4456_v21 = vld [vmem:[%s4986_s22 + $0x1d0] ss:$8 sps:$4 sm:$0xff]  }
  0xb7   : > { %1579 = vmatprep.subr.bf16.mxu1 %v4363_v22  ;;  %2599 = vmatprep.subr.bf16.mxu0 %v4369_v23  ;;  %v4459_v22 = vld [vmem:[%s5727_s1 + $0x4b4] ss:$8 sps:$4 sm:$0xff]   ;;  %v4460_v23 = vld [vmem:[%s4986_s22 + $0xe4] ss:$8 sps:$4 sm:$0xff]  }
  0xb9   : > { %1357 = vmatmul.mubr.bf16.vlgmr.msra.gmra.mrb[0].mxu1 %v4358_v24  ;;  %2377 = vmatmul.mubr.bf16.vlgmr.msra.gmra.mrb[0].mxu0 %v4364_v26  ;;  %v4466_v24 = vld [vmem:[%s4986_s22 + $0x1e4] ss:$8 sps:$4 sm:$0xff]  }
  0xba   : > { %1580 = vmatpush1.bf16.msra.mxu1 %v4361_v25  ;;  %2600 = vmatpush1.bf16.msra.mxu0 %v4367_v27  ;;  %v4457_v25 = vld [vmem:[%s5727_s1 + $0x4b0] ss:$8 sps:$4 sm:$0xff]   ;;  %v4465_v26 = vld [vmem:[%s5727_s1 + $0x4c4] ss:$8 sps:$4 sm:$0xff]   ;;  %v4462_v27 = vld [vmem:[%s4986_s22 + $0xe0] ss:$8 sps:$4 sm:$0xff]  }
  0xbb   : > { %1581 = vmatprep.subr.bf16.mxu1 %v4372_v28  ;;  %2601 = vmatprep.subr.bf16.mxu0 %v4375_v29  ;;  %v4468_v28 = vld [vmem:[%s4986_s22 + $0x1e0] ss:$8 sps:$4 sm:$0xff]  }
  0xbc   : > { %3540 = vmatprep.mubr.msk.bf16.mxu1 %vm861_vm0, %v4382_v30  ;;  %3764 = vmatprep.mubr.msk.bf16.mxu0 %vm861_vm0, %v4388_v31  ;;  %v4463_v29 = vld [vmem:[%s5727_s1 + $0x4c0] ss:$8 sps:$4 sm:$0xff]   ;;  %v4472_v30 = vld [vmem:[%s4986_s22 + $0xf4] ss:$8 sps:$4 sm:$0xff]  }
  0xbd   : > { %v4471_v31 = vld [vmem:[%s5727_s1 + $0x4d4] ss:$8 sps:$4 sm:$0xff]  }
  0xbe   : > { %1582 = vmatpush1.bf16.msra.mxu1 %v4370_v32  ;;  %2602 = vmatpush1.bf16.msra.mxu0 %v4373_v33  ;;  %v4478_v32 = vld [vmem:[%s4986_s22 + $0x1f4] ss:$8 sps:$4 sm:$0xff]   ;;  %v4469_v33 = vld [vmem:[%s5727_s1 + $0x4d0] ss:$8 sps:$4 sm:$0xff]  }
  0xbf   : > { %1583 = vmatprep.subr.bf16.mxu1 %v4378_v34  ;;  %2603 = vmatprep.subr.bf16.mxu0 %v4381_v35  ;;  %v4477_v34 = vld [vmem:[%s5727_s1 + $0x4e4] ss:$8 sps:$4 sm:$0xff]   ;;  %v4474_v35 = vld [vmem:[%s4986_s22 + $0xf0] ss:$8 sps:$4 sm:$0xff]  }
  0xc1   : > { %1367 = vmatmul.mubr.bf16.gmra.mrb[4].mxu1 %v4384_v37  ;;  %2387 = vmatmul.mubr.bf16.gmra.mrb[4].mxu0 %v4393_v38  ;;  %v4475_v37 = vld [vmem:[%s5727_s1 + $0x4e0] ss:$8 sps:$4 sm:$0xff]   ;;  %v4489_v38 = vld [vmem:[%s4986_s22 + $0x204] ss:$8 sps:$4 sm:$0xff]  }
  0xc2   : > { %1584 = vmatpush1.bf16.msra.mxu1 %v4376_v36  ;;  %2604 = vmatpush1.bf16.msra.mxu0 %v4379_v39  ;;  %v4480_v36 = vld [vmem:[%s4986_s22 + $0x1f0] ss:$8 sps:$4 sm:$0xff]   ;;  %v4483_v39 = vld [vmem:[%s5727_s1 + $0x4f4] ss:$8 sps:$4 sm:$0xff]  }
  0xc3   : > { %1585 = vmatprep.subr.bf16.mxu1 %v4387_v40  ;;  %2605 = vmatprep.subr.bf16.mxu0 %v4392_v41  ;;  %v4481_v40 = vld [vmem:[%s5727_s1 + $0x4f0] ss:$8 sps:$4 sm:$0xff]   ;;  %v4486_v41 = vld [vmem:[%s5727_s1 + $0x504] ss:$8 sps:$4 sm:$0xff]  }
  0xc4   : > { %3541 = vmatprep.mubr.msk.bf16.mxu1 %vm861_vm0, %v4400_v42  ;;  %3765 = vmatprep.mubr.msk.bf16.mxu0 %vm861_vm0, %v4406_v43  ;;  %v4484_v42 = vld [vmem:[%s5727_s1 + $0x500] ss:$8 sps:$4 sm:$0xff]  }
  0xc5   : > { %v4487_v43 = vld [vmem:[%s4986_s22 + $0x200] ss:$8 sps:$4 sm:$0xff]  }
  0xc6   : > { %1586 = vmatpush1.bf16.msra.mxu1 %v4385_v44  ;;  %2606 = vmatpush1.bf16.msra.mxu0 %v4390_v45  ;;  %v4490_v44 = vld [vmem:[%s4986_s22 + $0x214] ss:$8 sps:$4 sm:$0xff]   ;;  %v4492_v45 = vld [vmem:[%s4986_s22 + $0x210] ss:$8 sps:$4 sm:$0xff]  }
  0xc7   : > { %1587 = vmatprep.subr.bf16.mxu1 %v4396_v46  ;;  %2607 = vmatprep.subr.bf16.mxu0 %v4399_v47  ;;  %v4493_v46 = vld [vmem:[%s4986_s22 + $0x224] ss:$8 sps:$4 sm:$0xff]   ;;  %v4495_v47 = vld [vmem:[%s4986_s22 + $0x220] ss:$8 sps:$4 sm:$0xff]  }
  0xc9   : > { %1377 = vmatmul.mubr.bf16.gmra.mrb[8].mxu1 %v4402_v49  ;;  %2397 = vmatmul.mubr.bf16.gmra.mrb[8].mxu0 %v4411_v50  ;;  %v4498_v49 = vld [vmem:[%s4986_s22 + $0x230] ss:$8 sps:$4 sm:$0xff]   ;;  %v4499_v50 = vld [vmem:[%s5728_s2 + $0x40] sm:$0xff]  }
  0xca   : > { %1588 = vmatpush1.bf16.msra.mxu1 %v4394_v48  ;;  %2608 = vmatpush1.bf16.msra.mxu0 %v4397_v51  ;;  %v4496_v48 = vld [vmem:[%s4986_s22 + $0x234] ss:$8 sps:$4 sm:$0xff]   ;;  %v4500_v51 = vld [vmem:[%s5728_s2] sm:$0xff]   ;;  %s3400_s22 = sshll.u32 %s675_s18, 3  ;;  %s3899_s18 = sshll.u32 %s4597_s9, 5 }
  0xcb   : > { %1589 = vmatprep.subr.bf16.mxu1 %v4405_v52  ;;  %2609 = vmatprep.subr.bf16.mxu0 %v4410_v53  ;;  %v4501_v52 = vld [vmem:[%s5728_s2 + $0x48] sm:$0xff]   ;;  %s5622_s25 = scalar_lea.vmem %s5733_s7, %s3400_s22  ;;  %s3283_s22 = sadd.s32 %s3899_s18, %s5608_s13 }
  0xcc   : > { %3542 = vmatprep.mubr.msk.bf16.mxu1 %vm861_vm0, %v4418_v54  ;;  %3766 = vmatprep.mubr.msk.bf16.mxu0 %vm861_vm0, %v4424_v55  ;;  %v4502_v53 = vld [vmem:[%s5728_s2 + $0x8] sm:$0xff]   ;;  %v4503_v54 = vld [vmem:[%s5728_s2 + $0x50] sm:$0xff]   ;;  %s3900_s9 = sshll.u32 %s3283_s22, 7  ;;  %s3286_s13 = sshll.u32 %s5636_s0, 4  ;;  %s5670_s13 = int_to_ptr.vmem [resolvable:$true] %s3286_s13 }
  0xcd   : > { %v4504_v55 = vld [vmem:[%s5728_s2 + $0x10] sm:$0xff]   ;;  %s5667_s16 = scalar_lea.hbm %s5734_s8, %s3900_s9  ;;  %s4515_s26 = scalar_lea.vmem %s5670_s13, 1024 }
  0xce   : > { %1590 = vmatpush1.bf16.msra.mxu1 %v4403_v56  ;;  %2610 = vmatpush1.bf16.msra.mxu0 %v4408_v57  ;;  %v4505_v56 = vld [vmem:[%s5728_s2 + $0x58] sm:$0xff]   ;;  %p4516_p3 = scmp.ne.s32.totalorder %s5670_s13, %s4515_s26 }
  0xcf   : > { %1591 = vmatprep.subr.bf16.mxu1 %v4414_v58  ;;  %2611 = vmatprep.subr.bf16.mxu0 %v4417_v59  ;;  %v4506_v57 = vld [vmem:[%s5728_s2 + $0x18] sm:$0xff]   ;;  %v4507_v58 = vld [vmem:[%s5728_s2 + $0x60] sm:$0xff]  }
  0xd0   : > { %v4508_v59 = vld [vmem:[%s5728_s2 + $0x20] sm:$0xff]   ;;  %p4517_p4 = pnand %p4516_p3, %p4719_p8 }
  0xd1   : > { %1387 = vmatmul.mubr.bf16.gmra.mrb[12].mxu1 %v4420_v62  ;;  %2407 = vmatmul.mubr.bf16.gmra.mrb[12].mxu0 %v4429_v63  ;;  %v4511_v62 = vld [vmem:[%s5728_s2 + $0x70] sm:$0xff]  }
  0xd2   : > { %1592 = vmatpush1.bf16.msra.mxu1 %v4412_v60  ;;  %2612 = vmatpush1.bf16.msra.mxu0 %v4415_v61  ;;  %v4509_v60 = vld [vmem:[%s5728_s2 + $0x68] sm:$0xff]   ;;  %v4512_v63 = vld [vmem:[%s5728_s2 + $0x30] sm:$0xff]   ;;  %p4518_p5 = pneg %p4517_p4 }
  0xd3   : > { %1593 = vmatprep.subr.bf16.mxu1 %v4423_v0  ;;  %2613 = vmatprep.subr.bf16.mxu0 %v4428_v1  ;;  %v4510_v61 = vld [vmem:[%s5728_s2 + $0x28] sm:$0xff]   ;;  %v4513_v0 = vld [vmem:[%s5728_s2 + $0x78] sm:$0xff]  }
  0xd4   : > { %3595 = vmatprep.mubr.msk.bf16.mxu1 %vm861_vm0, %v4438_v2  ;;  %3819 = vmatprep.mubr.msk.bf16.mxu0 %vm861_vm0, %v4441_v3  ;;  %v4514_v1 = vld [vmem:[%s5728_s2 + $0x38] sm:$0xff]  }
  0xd6   : > { %1594 = vmatpush1.bf16.msra.mxu1 %v4421_v4  ;;  %2614 = vmatpush1.bf16.msra.mxu0 %v4426_v5 }
  0xd7   : > { %1595 = vmatprep.subr.bf16.mxu1 %v4432_v6  ;;  %2615 = vmatprep.subr.bf16.mxu0 %v4435_v7 }
  0xda   : > { %1596 = vmatpush1.bf16.msra.mxu1 %v4430_v8  ;;  %2616 = vmatpush1.bf16.msra.mxu0 %v4433_v9 }
  0xdb   : > { %2854 = vmatprep.subr.bf16.mxu0 %v4444_v10  ;;  %3904 = vmatprep.subr.bf16.mxu1 %v4499_v50 }
  0xdd   : > { %1612 = vmatmul.mubr.bf16.vlgmr.msra.gmra.mrb[0].mxu1 %v4436_v11  ;;  %2632 = vmatmul.mubr.bf16.vlgmr.msra.gmra.mrb[0].mxu0 %v4439_v12 }
  0xde   : > { %2855 = vmatpush1.bf16.msra.mxu0 %v4442_v13  ;;  %3596 = vmatprep.mubr.msk.bf16.mxu1 %vm861_vm0, %v4448_v15 }
  0xdf   : > { %2856 = vmatprep.subr.bf16.mxu0 %v4447_v14  ;;  %3820 = vmatprep.mubr.msk.bf16.mxu0 %vm861_vm0, %v4454_v16  ;;  %v2945_v14 = vlaneseq }
  0xe0   : > { %3905 = vmatpush3.bf16.msra.mxu1 %v4500_v51 }
  0xe1   : > { %3906 = vmatprep.subr.bf16.mxu1 %v4501_v52 }
  0xe2   : > { %2857 = vmatpush1.bf16.msra.mxu0 %v4445_v17 }
  0xe3   : > { %2858 = vmatprep.subr.bf16.mxu0 %v4453_v18 }
  0xe4   : > { %3907 = vmatpush3.bf16.msra.mxu1 %v4502_v53 }
  0xe5   : > { %1622 = vmatmul.mubr.bf16.gmra.mrb[4].mxu1 %v4450_v19  ;;  %2642 = vmatmul.mubr.bf16.gmra.mrb[4].mxu0 %v4456_v21  ;;  %v2946_v19 = vshrl.u32 %v2945_v14, 7  ;;  %v2943_v21 = vld [vmem:[%s5729_s3] sm:$0x3] }
  0xe6   : > { %2859 = vmatpush1.bf16.msra.mxu0 %v4451_v20  ;;  %3597 = vmatprep.mubr.msk.bf16.mxu1 %vm861_vm0, %v4460_v23  ;;  %v2971_v23 = vld [vmem:[%s5730_s4] sm:$0x3] }
  0xe7   : > { %2860 = vmatprep.subr.bf16.mxu0 %v4459_v22  ;;  %3821 = vmatprep.mubr.msk.bf16.mxu0 %vm861_vm0, %v4466_v24  ;;  %v2947_v20 = vsub.s32 0, %v2946_v19  ;;  %v2951_v22 = vsub.s32 1, %v2946_v19 }
  0xe8   : > { %3908 = vmatprep.subr.bf16.mxu1 %v4503_v54 }
  0xe9   : > { %3909 = vmatpush3.bf16.msra.mxu1 %v4504_v55  ;;  %v5560_v24 = vrot.slane %v2943_v21, %v2947_v20 }
  0xea   : > { %2861 = vmatpush1.bf16.msra.mxu0 %v4457_v25  ;;  %3910 = vmatprep.subr.bf16.mxu1 %v4505_v56 }
  0xeb   : > { %2862 = vmatprep.subr.bf16.mxu0 %v4465_v26  ;;  %v5562_v26 = vrot.slane %v2943_v21, %v2951_v22 }
  0xed   : > { %1632 = vmatmul.mubr.bf16.gmra.mrb[8].mxu1 %v4462_v27  ;;  %2652 = vmatmul.mubr.bf16.gmra.mrb[8].mxu0 %v4468_v28  ;;  %v5564_v28 = vrot.slane %v2971_v23, %v2947_v20 }
  0xee   : > { %2863 = vmatpush1.bf16.msra.mxu0 %v4463_v29  ;;  %3598 = vmatprep.mubr.msk.bf16.mxu1 %vm861_vm0, %v4472_v30 }
  0xef   : > { %2864 = vmatprep.subr.bf16.mxu0 %v4471_v31  ;;  %3822 = vmatprep.mubr.msk.bf16.mxu0 %vm861_vm0, %v4478_v32  ;;  %v5566_v31 = vrot.slane %v2971_v23, %v2951_v22 }
  0xf0   : > { %3911 = vmatpush3.bf16.msra.mxu1 %v4506_v57 }
  0xf1   : > { %3912 = vmatprep.subr.bf16.mxu1 %v4507_v58 }
  0xf2   : > { %2865 = vmatpush1.bf16.msra.mxu0 %v4469_v33 }
  0xf3   : > { %2866 = vmatprep.subr.bf16.mxu0 %v4477_v34 }
  0xf4   : > { %3913 = vmatpush3.bf16.msra.mxu1 %v4508_v59 }
  0xf5   : > { %1642 = vmatmul.mubr.bf16.gmra.mrb[12].mxu1 %v4474_v35  ;;  %2662 = vmatmul.mubr.bf16.gmra.mrb[12].mxu0 %v4480_v36 }
  0xf6   : > { %2867 = vmatpush1.bf16.msra.mxu0 %v4475_v37  ;;  %3875 = vmatprep.mubr.msk.bf16.mxu0 %vm861_vm0, %v4489_v38 }
  0xf7   : > { %2868 = vmatprep.subr.bf16.mxu0 %v4483_v39  ;;  %3914 = vmatprep.subr.bf16.mxu1 %v4509_v60 }
  0xf8   : > { %3915 = vmatpush3.bf16.msra.mxu1 %v4510_v61 }
  0xf9   : > { %3916 = vmatprep.subr.bf16.mxu1 %v4511_v62 }
  0xfa   : > { %2869 = vmatpush1.bf16.msra.mxu0 %v4481_v40 }
  0xfb   : > { %2870 = vmatprep.subr.bf16.mxu0 %v4486_v41 }
  0xfc   : > { %3917 = vmatpush3.bf16.msra.mxu1 %v4512_v63 }
  0xfd   : > { %3918 = vmatprep.subr.bf16.mxu1 %v4513_v0 }
  0xfe   : > { %2871 = vmatpush1.bf16.msra.mxu0 %v4484_v42 }
 0x100   : > { %3919 = vmatpush3.bf16.msra.mxu1 %v4514_v1 }
 0x101   : > { %2887 = vmatmul.mubr.bf16.vlgmr.msra.gmra.mrb[0].mxu0 %v4487_v43 }
 0x102   : > { %3876 = vmatprep.mubr.msk.bf16.mxu0 %vm861_vm0, %v4490_v44 }
 0x109   : > { %2897 = vmatmul.mubr.bf16.gmra.mrb[4].mxu0 %v4492_v45 }
 0x10a   : > { %3877 = vmatprep.mubr.msk.bf16.mxu0 %vm861_vm0, %v4493_v46 }
 0x111   : > { %2907 = vmatmul.mubr.bf16.gmra.mrb[8].mxu0 %v4495_v47 }
 0x112   : > { %3878 = vmatprep.mubr.msk.bf16.mxu0 %vm861_vm0, %v4496_v48 }
 0x119   : > { %2917 = vmatmul.mubr.bf16.gmra.mrb[12].mxu0 %v4498_v49 }
 0x1b0   : > { %v1613_v2 = vpop.f32.mrb[0].mxu1 }
 0x1b1   : > { %v1615_v3 = vpop.f32.mrb[1].mxu1 }
 0x1b2   : > { %v1617_v4 = vpop.f32.mrb[2].mxu1 }
 0x1b3   : > { %v1619_v5 = vpop.f32.mrb[3].mxu1 }
 0x1b8   : > { %v1623_v6 = vpop.f32.mrb[4].mxu1 }
 0x1b9   : > { %v1625_v7 = vpop.f32.mrb[5].mxu1 }
 0x1ba   : > { %v1627_v8 = vpop.f32.mrb[6].mxu1 }
 0x1bb   : > { %v1629_v9 = vpop.f32.mrb[7].mxu1 }
 0x1c0   : > { %v1633_v10 = vpop.f32.mrb[8].mxu1 }
 0x1c1   : > { %v5540_v11 = vpop.f32.mrb[9].mxu1 }
 0x1c2   : > { %v5542_v12 = vpop.f32.mrb[10].mxu1 }
 0x1c3   : > { %v5544_v13 = vpop.f32.mrb[11].mxu1 }
 0x1c8   : > { %v5546_v15 = vpop.f32.mrb[12].mxu1 }
 0x1c9   : > { %v5548_v16 = vpop.f32.mrb[13].mxu1 }
 0x1ca   : > { %v5550_v17 = vpop.f32.mrb[14].mxu1 }
 0x1cb   : > { %v5552_v18 = vpop.f32.mrb[15].mxu1 }
 0x1d4   : > { %v2888_v25 = vpop.f32.mrb[0].mxu0 }
 0x1d5   : > { %v3944_v27 = vadd.f32 %v2888_v25, %v1613_v2  ;;  %v2890_v29 = vpop.f32.mrb[1].mxu0 }
 0x1d6   : > { %v3945_v30 = vadd.f32 %v2890_v29, %v1615_v3  ;;  %v2892_v32 = vpop.f32.mrb[2].mxu0 }
 0x1d7   : > { %v2955_v33 = vmul.f32 %v3944_v27, %v5560_v24  ;;  %v3946_v34 = vadd.f32 %v2892_v32, %v1617_v4  ;;  %v2894_v35 = vpop.f32.mrb[3].mxu0 }
 0x1d8   : > { %v2956_v36 = vmul.f32 %v3945_v30, %v5562_v26  ;;  %v3947_v37 = vadd.f32 %v2894_v35, %v1619_v5 }
 0x1d9   : > { %v2983_v38 = vadd.f32 %v5564_v28, %v2955_v33  ;;  %v2957_v39 = vmul.f32 %v3946_v34, %v5560_v24 }
 0x1da   : > { %v2984_v40 = vadd.f32 %v5566_v31, %v2956_v36  ;;  %v2958_v41 = vmul.f32 %v3947_v37, %v5562_v26 }
 0x1db   : > { %v2985_v42 = vadd.f32 %v5564_v28, %v2957_v39  ;;  %v2999_v45 = vmax.f32 %v2983_v38, 0.0 }
 0x1dc   : > { %v2986_v43 = vadd.f32 %v5566_v31, %v2958_v41  ;;  %v2898_v44 = vpop.f32.mrb[4].mxu0  ;;  %v3000_v49 = vmax.f32 %v2984_v40, 0.0 }
 0x1dd   : > { %v3001_v46 = vmax.f32 %v2985_v42, 0.0  ;;  %v3948_v47 = vadd.f32 %v2898_v44, %v1623_v6  ;;  %v2900_v48 = vpop.f32.mrb[5].mxu0 }
 0x1de   : > { %v3002_v50 = vmax.f32 %v2986_v43, 0.0  ;;  %v3949_v51 = vadd.f32 %v2900_v48, %v1625_v7  ;;  %v2902_v52 = vpop.f32.mrb[6].mxu0 }
 0x1df   : > { %v3015_v53 = vpack.c.bf16 %v3001_v46, %v2999_v45  ;;  %v2959_v54 = vmul.f32 %v3948_v47, %v5560_v24  ;;  %v3950_v55 = vadd.f32 %v2902_v52, %v1627_v8  ;;  %v2904_v56 = vpop.f32.mrb[7].mxu0 }
 0x1e0   : > { %v2960_v57 = vmul.f32 %v3949_v51, %v5562_v26  ;;  %v3951_v58 = vadd.f32 %v2904_v56, %v1629_v9  ;;  %v3016_v59 = vpack.c.bf16 %v3002_v50, %v3000_v49 }
 0x1e1   : > { %v2987_v60 = vadd.f32 %v5564_v28, %v2959_v54  ;;  %v2961_v61 = vmul.f32 %v3950_v55, %v5560_v24 }
 0x1e2   : > { %v2988_v62 = vadd.f32 %v5566_v31, %v2960_v57  ;;  %v2962_v63 = vmul.f32 %v3951_v58, %v5562_v26  ;;  %3183 = vmatprep.mubr.bf16.mxu1 %v3016_v59  ;;  %v5627_v57 = vld [vmem:[%s5732_s6] ss:$0 sm:$0xff] }
 0x1e3   : > { %v2989_v0 = vadd.f32 %v5564_v28, %v2961_v61  ;;  %3184 = vmatmul.mubr.bf16.vlgmr.msra.gmra.mrb[16].mxu1 %v3015_v53  ;;  %v3003_v3 = vmax.f32 %v2987_v60, 0.0  ;;  %v3246_v61 = vld [vmem:[%s5622_s25] sm:$0xff] }
 0x1e4   : > { %v2990_v1 = vadd.f32 %v5566_v31, %v2962_v63  ;;  %v2908_v2 = vpop.f32.mrb[8].mxu0  ;;  %v3004_v7 = vmax.f32 %v2988_v62, 0.0 }
 0x1e5   : > { %v3005_v4 = vmax.f32 %v2989_v0, 0.0  ;;  %v3952_v5 = vadd.f32 %v2908_v2, %v1633_v10  ;;  %v2910_v6 = vpop.f32.mrb[9].mxu0  ;;  %v3247_v0 = vld [vmem:[%s5622_s25 + $0x8] sm:$0xff] }
 0x1e6   : > { %v3006_v8 = vmax.f32 %v2990_v1, 0.0  ;;  %v3953_v9 = vadd.f32 %v2910_v6, %v5540_v11  ;;  %v2912_v14 = vpop.f32.mrb[10].mxu0 }
 0x1e7   : > { %v2963_v19 = vmul.f32 %v3952_v5, %v5560_v24  ;;  %v3954_v20 = vadd.f32 %v2912_v14, %v5542_v12  ;;  %v2914_v21 = vpop.f32.mrb[11].mxu0  ;;  %v3017_v22 = vpack.c.bf16 %v3005_v4, %v3003_v3 }
 0x1e8   : > { %v2964_v23 = vmul.f32 %v3953_v9, %v5562_v26  ;;  %v3955_v25 = vadd.f32 %v2914_v21, %v5544_v13  ;;  %v3018_v27 = vpack.c.bf16 %v3006_v8, %v3004_v7 }
 0x1e9   : > { %v2991_v29 = vadd.f32 %v5564_v28, %v2963_v19  ;;  %v2965_v10 = vmul.f32 %v3954_v20, %v5560_v24  ;;  %v3248_v19 = vld [vmem:[%s5622_s25 + $0x10] sm:$0xff] }
 0x1ea   : > { %v2992_v30 = vadd.f32 %v5566_v31, %v2964_v23  ;;  %v2966_v11 = vmul.f32 %v3955_v25, %v5562_v26  ;;  %3191 = vmatprep.mubr.bf16.mxu1 %v3018_v27 }
 0x1eb   : > { %v2993_v32 = vadd.f32 %v5564_v28, %v2965_v10  ;;  %3192 = vmatmul.mubr.bf16.gmra.mrb[20].mxu1 %v3017_v22  ;;  %v3007_v34 = vmax.f32 %v2991_v29, 0.0  ;;  %v3249_v22 = vld [vmem:[%s5622_s25 + $0x18] sm:$0xff] }
 0x1ec   : > { %v2994_v12 = vadd.f32 %v5566_v31, %v2966_v11  ;;  %v2918_v33 = vpop.f32.mrb[12].mxu0  ;;  %v3008_v37 = vmax.f32 %v2992_v30, 0.0 }
 0x1ed   : > { %v3009_v35 = vmax.f32 %v2993_v32, 0.0  ;;  %v3956_v13 = vadd.f32 %v2918_v33, %v5546_v15  ;;  %v2920_v36 = vpop.f32.mrb[13].mxu0 }
 0x1ee   : > { %v3010_v38 = vmax.f32 %v2994_v12, 0.0  ;;  %v3957_v39 = vadd.f32 %v2920_v36, %v5548_v16  ;;  %v2922_v40 = vpop.f32.mrb[14].mxu0  ;;  %v3251_v36 = vld [vmem:[%s5622_s25 + $0x28] sm:$0xff] }
 0x1ef   : > { %v2967_v41 = vmul.f32 %v3956_v13, %v5560_v24  ;;  %v3958_v42 = vadd.f32 %v2922_v40, %v5550_v17  ;;  %v2924_v43 = vpop.f32.mrb[15].mxu0  ;;  %v3019_v44 = vpack.c.bf16 %v3009_v35, %v3007_v34  ;;  %v3250_v34 = vld [vmem:[%s5622_s25 + $0x20] sm:$0xff] }
 0x1f0   : > { %v2968_v45 = vmul.f32 %v3957_v39, %v5562_v26  ;;  %v3959_v46 = vadd.f32 %v2924_v43, %v5552_v18  ;;  %v3020_v47 = vpack.c.bf16 %v3010_v38, %v3008_v37 }
 0x1f1   : > { %v2995_v48 = vadd.f32 %v5564_v28, %v2967_v41  ;;  %v2969_v15 = vmul.f32 %v3958_v42, %v5560_v24 }
 0x1f2   : > { %v2996_v16 = vadd.f32 %v5566_v31, %v2968_v45  ;;  %v2970_v49 = vmul.f32 %v3959_v46, %v5562_v26  ;;  %3199 = vmatprep.mubr.bf16.mxu1 %v3020_v47  ;;  %v3252_v47 = vld [vmem:[%s5622_s25 + $0x30] sm:$0xff] }
 0x1f3   : > { %v2997_v17 = vadd.f32 %v5564_v28, %v2969_v15  ;;  %3200 = vmatmul.mubr.bf16.gmra.mrb[24].mxu1 %v3019_v44  ;;  %v3011_v51 = vmax.f32 %v2995_v48, 0.0  ;;  %v5617_v28 = vld [vmem:[%s5731_s5] ss:$0 sm:$0xff] }
 0x1f4   : > { %v2998_v50 = vadd.f32 %v5566_v31, %v2970_v49  ;;  %v3012_v52 = vmax.f32 %v2996_v16, 0.0  ;;  %v3253_v16 = vld [vmem:[%s5622_s25 + $0x38] sm:$0xff]  ;;  %s4611_s25 = smov [#allocation3]  }
 0x1f5   : > { %v3013_v18 = vmax.f32 %v2997_v17, 0.0  ;;  %s4519_s14 = sshll.u32 %s4611_s25, 4  ;;  %s4520_s14 = int_to_ptr.vmem [resolvable:$false] %s4519_s14 }
 0x1f6   : > { %v3014_v53 = vmax.f32 %v2998_v50, 0.0  ;;  %s4521_s21 = scalar_lea.vmem %s4520_s14, 2048  ;;  %p4522_p6 = scmp.lt.s32.totalorder %s5670_s13, %s4520_s14 }
 0x1f7   : > { %v3021_v54 = vpack.c.bf16 %v3013_v18, %v3011_v51  ;;  %p4523_p7 = scmp.lt.s32.totalorder %s4521_s21, %s4515_s26 }
 0x1f8   : > { %v3022_v55 = vpack.c.bf16 %v3014_v53, %v3012_v52 }
 0x1f9   : > { %p4524_p10 = por %p4523_p7, %p4522_p6 }
 0x1fa   : > { %3207 = vmatprep.mubr.bf16.mxu1 %v3022_v55 }
 0x1fb   : > { %3208 = vmatmul.mubr.bf16.gmra.mrb[28].mxu1 %v3021_v54  ;;  %p4525_p11 = pnand %p4524_p10, %p4518_p5 }
 0x2b6   : > { %v3920_v24 = vpop.f32.mrb[16].mxu1 }
 0x2b7   : > { %v3921_v26 = vpop.f32.mrb[17].mxu1 }
 0x2b8   : > { %v3922_v31 = vadd.f32 %v3921_v26, %v3920_v24  ;;  %v3923_v56 = vpop.f32.mrb[18].mxu1 }
 0x2b9   : > { %v3924_v58 = vpop.f32.mrb[19].mxu1 }
 0x2ba   : > { %v3223_v59 = vmul.f32 %v3922_v31, %v5617_v28  ;;  %v3925_v60 = vadd.f32 %v3924_v58, %v3923_v56 }
 0x2bc   : > { %v3238_v62 = vadd.f32 %v5627_v57, %v3223_v59  ;;  %v3224_v63 = vmul.f32 %v3925_v60, %v5617_v28 }
 0x2be   : > { %v3254_v1 = vadd.f32 %v3246_v61, %v3238_v62  ;;  %v3239_v2 = vadd.f32 %v5627_v57, %v3224_v63  ;;  %v3926_v3 = vpop.f32.mrb[20].mxu1 }
 0x2bf   : > { %v3927_v4 = vpop.f32.mrb[21].mxu1 }
 0x2c0   : > { %3262 = vst [vmem:[%s5636_s0] sm:$0xff] %v3254_v1  ;;  %v3255_v5 = vadd.f32 %v3247_v0, %v3239_v2  ;;  %v3928_v6 = vadd.f32 %v3927_v4, %v3926_v3  ;;  %v3929_v7 = vpop.f32.mrb[22].mxu1 }
 0x2c1   : > { %v3930_v8 = vpop.f32.mrb[23].mxu1 }
 0x2c2   : > { %3263 = vst [vmem:[%s5636_s0 + $0x8] sm:$0xff] %v3255_v5  ;;  %v3225_v9 = vmul.f32 %v3928_v6, %v5617_v28  ;;  %v3931_v14 = vadd.f32 %v3930_v8, %v3929_v7 }
 0x2c4   : > { %v3240_v20 = vadd.f32 %v5627_v57, %v3225_v9  ;;  %v3226_v21 = vmul.f32 %v3931_v14, %v5617_v28 }
 0x2c6   : > { %v3256_v23 = vadd.f32 %v3248_v19, %v3240_v20  ;;  %v3241_v25 = vadd.f32 %v5627_v57, %v3226_v21  ;;  %v3932_v27 = vpop.f32.mrb[24].mxu1 }
 0x2c7   : > { %v3933_v29 = vpop.f32.mrb[25].mxu1 }
 0x2c8   : > { %3264 = vst [vmem:[%s5636_s0 + $0x10] sm:$0xff] %v3256_v23  ;;  %v3257_v10 = vadd.f32 %v3249_v22, %v3241_v25  ;;  %v3934_v30 = vadd.f32 %v3933_v29, %v3932_v27  ;;  %v3935_v11 = vpop.f32.mrb[26].mxu1 }
 0x2c9   : > { %v3936_v32 = vpop.f32.mrb[27].mxu1 }
 0x2ca   : > { %3265 = vst [vmem:[%s5636_s0 + $0x18] sm:$0xff] %v3257_v10  ;;  %v3227_v12 = vmul.f32 %v3934_v30, %v5617_v28  ;;  %v3937_v33 = vadd.f32 %v3936_v32, %v3935_v11 }
 0x2cc   : > { %v3242_v35 = vadd.f32 %v5627_v57, %v3227_v12  ;;  %v3228_v13 = vmul.f32 %v3937_v33, %v5617_v28 }
 0x2ce   : > { %v3258_v37 = vadd.f32 %v3250_v34, %v3242_v35  ;;  %v3243_v38 = vadd.f32 %v5627_v57, %v3228_v13  ;;  %v3938_v39 = vpop.f32.mrb[28].mxu1 }
 0x2cf   : > { %v3939_v40 = vpop.f32.mrb[29].mxu1 }
 0x2d0   : > { %3266 = vst [vmem:[%s5636_s0 + $0x20] sm:$0xff] %v3258_v37  ;;  %v3259_v41 = vadd.f32 %v3251_v36, %v3243_v38  ;;  %v3940_v42 = vadd.f32 %v3939_v40, %v3938_v39  ;;  %v3941_v43 = vpop.f32.mrb[30].mxu1 }
 0x2d1   : > { %v3942_v44 = vpop.f32.mrb[31].mxu1 }
 0x2d2   : > { %3267 = vst [vmem:[%s5636_s0 + $0x28] sm:$0xff] %v3259_v41  ;;  %v3229_v45 = vmul.f32 %v3940_v42, %v5617_v28  ;;  %v3943_v46 = vadd.f32 %v3942_v44, %v3941_v43 }
 0x2d4   : > { %v3244_v48 = vadd.f32 %v5627_v57, %v3229_v45  ;;  %v3230_v15 = vmul.f32 %v3943_v46, %v5617_v28 }
 0x2d6   : > { %v3260_v49 = vadd.f32 %v3252_v47, %v3244_v48  ;;  %v3245_v17 = vadd.f32 %v5627_v57, %v3230_v15 }
 0x2d8   : > { %3268 = vst [vmem:[%s5636_s0 + $0x30] sm:$0xff] %v3260_v49  ;;  %v3261_v50 = vadd.f32 %v3253_v16, %v3245_v17 }
 0x2da   : > { %3269 = vst [vmem:[%s5636_s0 + $0x38] sm:$0xff] %v3261_v50 }
 0x2db   : > { %4528 = shalt.err (!%p4525_p11)
}
 0x2dc   : > { %s4529_s0 = scalar_lea.hbm %s5667_s16, 1024  ;;  %s4533_s9 = scalar_lea.hbm %s5734_s8, 8192 }
 0x2dd   : > { %p4530_p12 = scmp.ne.s32.totalorder %s5667_s16, %s4529_s0  ;;  %p4534_p1 = scmp.lt.u32.totalorder %s5667_s16, %s5734_s8 }
 0x2de   : > { %p4535_p2 = scmp.lt.u32.totalorder %s4533_s9, %s4529_s0  ;;  %p4537_p4 = scmp.lt.u32.totalorder %s4529_s0, %s5667_s16 }
 0x2df   : > { %p4531_p13 = pnand %p4530_p12, %p4719_p8 }
 0x2e0   : > { %p4536_p3 = por %p4535_p2, %p4534_p1 }
 0x2e1   : > { %p4532_p0 = pneg %p4531_p13 }
 0x2e2   : > { %p4538_p5 = por %p4537_p4, %p4536_p3 }
 0x2e4   : > { %p4539_p6 = pnand %p4538_p5, %p4532_p0 }
 0x2e6   : > { %4542 = shalt.err (!%p4539_p6)
}
 0x2e7   : > { %s4612_s26 = smov 128   ;;  %s4613_s25 = smov 8  }
 0x2e8   : > { %4075 = dma.vmem_to_hbm [thread:$0]  (%p4719_p8), %s5670_s13, 1024, %s5667_s16, %s3271_s30, %s4612_s26, %s4612_s26, %s4613_s25  }
 0x2e9 PF: > { %p4081_p7 = scmp.ge.s32.totalorder %s4609_s12, 2  ;;  %s3301_s14 = sand.u32 1, %s4581_s27  }
 0x2ea   : > { %s3302_s21 = scalar_lea.sflag [#allocation4], %s3301_s14 }
 0x2eb   : > { %p4078_p10 = pnand %p4081_p7, %p4723_p9 }
 0x2ed   : > { %4576 = dma.done.wait (!%p4078_p10), %s3302_s21, 1024  }
 0x2ee   : > { %4578 = vsyncadd (!%p4078_p10), %s3302_s21, 4294966272  ;;  %s21_s12 = sadd.s32 1, %s4609_s12   ;;  %s5744_s19 = sld [smem:[#allocation6_spill]] }
 0x2ef   : > { %p18_p11 = scmp.ge.s32.totalorder %s21_s12, 10   ;;  %s5745_s17 = sld [smem:[#allocation7_spill]] }
 0x2f0   : > { %s5746_s27 = smov %s4585_s28  ;;  %s5747_s28 = smov %s4589_s29 }
 0x2f1   : > { %s5748_s29 = smov %s4731_s24  ;;  %s5749_s30 = smov %s4601_s10 }
 0x2f2   : > { %s5750_s9 = smov %s4605_s11  ;;  %20 = sbr.rel (!%p18_p11) target bundleno = 7 (0x7), region = 149 }
 0x2f4   : > { %s5751_s10 = smov %s5744_s19 }
 0x2f5   : > { %s5752_s11 = smov %s5745_s17 }
 0x2f9   :  { %3307 = vsyncpa [#allocation4], 1 }
 0x2fa   :  { %3309 = vsyncpa [#allocation4 + $0x1], 1 }

</bundles_post_ra>
